<compile_context>
chip_gen: v7x
topology: tpu7x:2x2x1
jax: 0.10.0
libtpu: 0.0.40
codegen_flags: <defaults>
</compile_context>

<pallas_src>
import jax
import jax.numpy as jnp
import numpy as np
from jax.experimental import pallas as pl
from jax.experimental.pallas import tpu as pltpu


# ---------------------------------------------------------------------------
# Fused Up-block kernel builder
# ---------------------------------------------------------------------------
def build_up_kernel(n_layers, KH, KW, P, N, H, W, C1, C2, couts):
    Hp, Wp = H + 2 * P, W + 2 * P          # padded grid (same for every layer)
    HpWp = Hp * Wp
    L = N * HpWp                           # flattened padded length (lanes)
    max_off = (KH - 1) * Wp + (KW - 1)     # largest tap shift
    Lo = L - max_off                       # computed output window (covers all valid pixels)
    HW = H * W
    R = N * H * W                          # number of valid output pixels (BN count)
    shift_off = P * Wp + P                 # flat shift: output pixel -> next layer's padded slot

    def kernel(*refs):
        x_ref, skip_ref, mask_ref = refs[0], refs[1], refs[2]
        layer_refs = refs[3:3 + 3 * n_layers]            # (w9, gamma, beta) per layer
        out_ref = refs[3 + 3 * n_layers]
        pads = refs[4 + 3 * n_layers:]                   # per-layer padded activations (VMEM)

        mask = mask_ref[...]                             # (1, Lo), 1.0 at valid output pixels

        # --- stage the concatenated, zero-padded input in (C, L) layout -----
        # (concat + zero-pad fused; the skip is already center-cropped by the
        #  boundary copy, so indexing mirrors x exactly)
        p0 = pads[0]
        p0[...] = jnp.zeros_like(p0)                     # lane-dense, ~6 vreg stores
        for n in range(N):
            for y in range(H):
                src = n * HW + y * W
                dst = n * HpWp + (y + P) * Wp + P
                p0[0:C1, dst:dst + W] = x_ref[:, src:src + W]
                p0[C1:C1 + C2, dst:dst + W] = skip_ref[:, src:src + W]

        # --- stacked Conv -> BN -> ReLU layers, all in VMEM -----------------
        for li in range(n_layers):
            w_ref, g_ref, b_ref = layer_refs[3 * li:3 * li + 3]
            pad = pads[li]
            Cout = couts[li]

            # conv: KH*KW accumulated (Cout,Cin)@(Cin,Lo) dots; each tap is a
            # static lane-offset slice of the padded scratch (no col buffer).
            acc = None
            t = 0
            for dy in range(KH):
                for dx in range(KW):
                    off = dy * Wp + dx
                    c = jnp.dot(w_ref[t], pad[:, off:off + Lo],
                                preferred_element_type=jnp.float32)
                    acc = c if acc is None else acc + c
                    t += 1                                # (Cout, Lo), f32

            # BatchNorm2d (training batch stats, biased var, eps=1e-5) + ReLU,
            # one-pass masked statistics, folded into a single FMA epilogue.
            # (conv bias omitted: it cancels exactly against the batch mean.)
            am = acc * mask
            s1 = jnp.sum(am, axis=1, keepdims=True)       # (Cout, 1)
            s2 = jnp.sum(acc * am, axis=1, keepdims=True)
            mean = s1 * (1.0 / R)
            var = s2 * (1.0 / R) - mean * mean
            scale = g_ref[...] * jax.lax.rsqrt(var + 1e-5)
            shift = b_ref[...] - mean * scale
            y_act = jnp.maximum(acc * scale + shift, 0.0) * mask   # zero at invalid pixels

            if li + 1 < n_layers:
                # re-pad for the next layer: one lane-offset store + halo strips
                # (relies on y_act being zero at invalid / out-of-row positions)
                nxt = pads[li + 1]
                nxt[:, 0:shift_off] = jnp.zeros((Cout, shift_off), jnp.float32)
                nxt[:, shift_off:shift_off + Lo] = y_act
                nxt[:, shift_off + Lo:L] = jnp.zeros((Cout, L - shift_off - Lo),
                                                     jnp.float32)
            else:
                out_ref[:, 0:Lo] = y_act                  # lane-dense output store
                out_ref[:, Lo:L] = jnp.zeros((Cout, L - Lo), jnp.float32)

    return kernel


# ---------------------------------------------------------------------------
# Wrapper (single pallas_call; NCHW boundary)
# ---------------------------------------------------------------------------
def up_forward(x_nchw, skip_nchw, params, *, padding=1):
    N, C1, H, W = x_nchw.shape
    Ns, C2, Hs, Ws = skip_nchw.shape
    assert Ns == N and Hs >= H and Ws >= W
    n_layers = len(params)
    kh, kw, cin0, _ = params[0]["w"].shape
    assert 2 * padding == kh - 1 == kw - 1, "fused path assumes same-size convs"
    assert cin0 == C1 + C2, "first conv in_channels must equal C1 + C2"

    # torchvision center_crop offsets
    top = int(round((Hs - H) / 2.0))
    left = int(round((Ws - W) / 2.0))

    P = padding
    Hp, Wp = H + 2 * P, W + 2 * P
    HpWp = Hp * Wp
    L = N * HpWp
    max_off = (kh - 1) * Wp + (kw - 1)
    Lo = L - max_off

    # Channel-major flat inputs.  The skip crop rides along the (already
    # required) boundary transpose, so only the cropped window reaches VMEM.
    x2d = jnp.transpose(x_nchw, (1, 0, 2, 3)).reshape(C1, N * H * W).astype(jnp.float32)
    skip2d = jnp.transpose(
        skip_nchw[:, :, top:top + H, left:left + W],
        (1, 0, 2, 3)).reshape(C2, N * H * W).astype(jnp.float32)

    # Validity mask over flattened padded coordinates (compile-time constant).
    idx = np.arange(Lo)
    rr = idx % HpWp
    mask = jnp.asarray(((rr // Wp < H) & (rr % Wp < W)).astype(np.float32)[None, :])

    flat_inputs = [x2d, skip2d, mask]
    couts = []
    pad_shapes = [(C1 + C2, L)]
    cin = C1 + C2
    for layer in params:
        lkh, lkw, lcin, lcout = layer["w"].shape
        assert (lkh, lkw) == (kh, kw) and lcin == cin, "channel mismatch in Up stack"
        flat_inputs += [
            # per-tap (Cout, Cin) weights: (kh, kw, cin, cout) -> (kh*kw, cout, cin)
            jnp.transpose(layer["w"], (0, 1, 3, 2)).reshape(lkh * lkw, lcout, lcin)
               .astype(jnp.float32),
            layer["gamma"].reshape(lcout, 1).astype(jnp.float32),
            layer["beta"].reshape(lcout, 1).astype(jnp.float32),
            # note: conv bias intentionally not passed (cancels under BN)
        ]
        couts.append(lcout)
        pad_shapes.append((lcout, L))
        cin = lcout
    pad_shapes = pad_shapes[:-1]            # last layer writes out_ref directly

    vmem = pl.BlockSpec(memory_space=pltpu.MemorySpace.VMEM)
    out2d = pl.pallas_call(
        build_up_kernel(n_layers, kh, kw, P, N, H, W, C1, C2, couts),
        out_shape=jax.ShapeDtypeStruct((couts[-1], L), jnp.float32),
        in_specs=[vmem] * len(flat_inputs),
        out_specs=vmem,
        scratch_shapes=[pltpu.VMEM(s, jnp.float32) for s in pad_shapes],
    )(*flat_inputs)

    # one boundary reshape/slice/transpose back to NCHW
    out = out2d.reshape(couts[-1], N, Hp, Wp)[:, :, :H, :W]
    return jnp.transpose(out, (1, 0, 2, 3))


# ---------------------------------------------------------------------------
# Pure-JAX reference (correctness check only; keeps the conv bias on purpose)
# ---------------------------------------------------------------------------
def up_forward_ref(x, skip, params, *, padding=1):
    N, C1, H, W = x.shape
    Hs, Ws = skip.shape[2], skip.shape[3]
    top = int(round((Hs - H) / 2.0))
    left = int(round((Ws - W) / 2.0))
    h = jnp.concatenate(
        [x.astype(jnp.float32),
         skip[:, :, top:top + H, left:left + W].astype(jnp.float32)], axis=1)
    for layer in params:
        y = jax.lax.conv_general_dilated(
            h, layer["w"], (1, 1), [(padding, padding)] * 2,
            dimension_numbers=("NCHW", "HWIO", "NCHW"))
        y = y + layer["b"].reshape(1, -1, 1, 1)
        mean = jnp.mean(y, axis=(0, 2, 3), keepdims=True)
        var = jnp.mean((y - mean) ** 2, axis=(0, 2, 3), keepdims=True)
        y = (y - mean) * jax.lax.rsqrt(var + 1e-5)
        y = y * layer["gamma"].reshape(1, -1, 1, 1) + layer["beta"].reshape(1, -1, 1, 1)
        h = jnp.maximum(y, 0.0)
    return h


# ---------------------------------------------------------------------------
# Deterministic parameter initialization: Up(in_channels=8, out_channels=8)
# ---------------------------------------------------------------------------
def init_up_params(key, in_channels, out_channels, stack=2, kernel_size=3):
    params = []
    cin = in_channels
    for _ in range(stack):
        key, kw, kb, kg, kbeta = jax.random.split(key, 5)
        params.append({
            "w": 0.1 * jax.random.normal(
                kw, (kernel_size, kernel_size, cin, out_channels), jnp.float32),
            "b": 0.1 * jax.random.normal(kb, (out_channels,), jnp.float32),
            "gamma": 1.0 + 0.1 * jax.random.normal(kg, (out_channels,), jnp.float32),
            "beta": 0.1 * jax.random.normal(kbeta, (out_channels,), jnp.float32),
        })
        cin = out_channels
    return params


if __name__ == "__main__":
    key = jax.random.PRNGKey(0)
    k_x, k_skip, k_p = jax.random.split(key, 3)

    # x: (N, C, H, W) = (2, 4, 16, 16); skip: (2, 4, 20, 20) is center-cropped
    # to 16x16, channel-concat -> 8 channels == in_channels of the first conv.
    x = jax.random.normal(k_x, (2, 4, 16, 16), jnp.float32)
    skip = jax.random.normal(k_skip, (2, 4, 20, 20), jnp.float32)

    params = init_up_params(k_p, in_channels=8, out_channels=8, stack=2)

    out = jax.block_until_ready(up_forward(x, skip, params, padding=1))
    ref = jax.block_until_ready(up_forward_ref(x, skip, params, padding=1))

    np.testing.assert_allclose(np.asarray(out), np.asarray(ref),
                               rtol=1e-4, atol=1e-4)
    assert out.shape == (2, 8, 16, 16)

    print("KERNEL_OK")
</pallas_src>

<mosaic_0001>
module attributes {stable_mosaic.version = 11 : i64} {
  func.func @kernel(%arg0: memref<4x512xf32, #tpu.memory_space<vmem>>, %arg1: memref<4x512xf32, #tpu.memory_space<vmem>>, %arg2: memref<1x610xf32, #tpu.memory_space<vmem>>, %arg3: memref<9x8x8xf32, #tpu.memory_space<vmem>>, %arg4: memref<8x1xf32, #tpu.memory_space<vmem>>, %arg5: memref<8x1xf32, #tpu.memory_space<vmem>>, %arg6: memref<9x8x8xf32, #tpu.memory_space<vmem>>, %arg7: memref<8x1xf32, #tpu.memory_space<vmem>>, %arg8: memref<8x1xf32, #tpu.memory_space<vmem>>, %arg9: memref<8x648xf32, #tpu.memory_space<vmem>>, %arg10: memref<8x648xf32, #tpu.memory_space<vmem>>, %arg11: memref<8x648xf32, #tpu.memory_space<vmem>>) attributes {dimension_semantics = [], scalar_prefetch = 0 : i64, scratch_operands = 2 : i64, tpu.core_type = #tpu.core_type<tc>} {
    %c0 = arith.constant 0 : index
    %c0_0 = arith.constant 0 : index
    %0 = vector.load %arg2[%c0, %c0_0] : memref<1x610xf32, #tpu.memory_space<vmem>>, vector<1x610xf32>
    %cst = arith.constant 0.000000e+00 : f32
    %1 = vector.broadcast %cst : f32 to vector<8x648xf32>
    %c0_1 = arith.constant 0 : index
    %c0_2 = arith.constant 0 : index
    %2 = vector.load %arg10[%c0_1, %c0_2] : memref<8x648xf32, #tpu.memory_space<vmem>>, vector<8x648xf32>
    tpu.vector_store %arg10[%c0_1, %c0_2], %1 {strides = array<i32>} : memref<8x648xf32, #tpu.memory_space<vmem>>, vector<8x648xf32>,
    %c0_3 = arith.constant 0 : index
    %c0_4 = arith.constant 0 : index
    %3 = vector.load %arg0[%c0_3, %c0_4] : memref<4x512xf32, #tpu.memory_space<vmem>>, vector<4x16xf32>
    %c0_5 = arith.constant 0 : index
    %c19 = arith.constant 19 : index
    %4 = vector.load %arg10[%c0_5, %c19] : memref<8x648xf32, #tpu.memory_space<vmem>>, vector<4x16xf32>
    tpu.vector_store %arg10[%c0_5, %c19], %3 {strides = array<i32>} : memref<8x648xf32, #tpu.memory_space<vmem>>, vector<4x16xf32>,
    %c0_6 = arith.constant 0 : index
    %c0_7 = arith.constant 0 : index
    %5 = vector.load %arg1[%c0_6, %c0_7] : memref<4x512xf32, #tpu.memory_space<vmem>>, vector<4x16xf32>
    %c4 = arith.constant 4 : index
    %c19_8 = arith.constant 19 : index
    %6 = vector.load %arg10[%c4, %c19_8] : memref<8x648xf32, #tpu.memory_space<vmem>>, vector<4x16xf32>
    tpu.vector_store %arg10[%c4, %c19_8], %5 {strides = array<i32>} : memref<8x648xf32, #tpu.memory_space<vmem>>, vector<4x16xf32>,
    %c0_9 = arith.constant 0 : index
    %c16 = arith.constant 16 : index
    %7 = vector.load %arg0[%c0_9, %c16] : memref<4x512xf32, #tpu.memory_space<vmem>>, vector<4x16xf32>
    %c0_10 = arith.constant 0 : index
    %c37 = arith.constant 37 : index
    %8 = vector.load %arg10[%c0_10, %c37] : memref<8x648xf32, #tpu.memory_space<vmem>>, vector<4x16xf32>
    tpu.vector_store %arg10[%c0_10, %c37], %7 {strides = array<i32>} : memref<8x648xf32, #tpu.memory_space<vmem>>, vector<4x16xf32>,
    %c0_11 = arith.constant 0 : index
    %c16_12 = arith.constant 16 : index
    %9 = vector.load %arg1[%c0_11, %c16_12] : memref<4x512xf32, #tpu.memory_space<vmem>>, vector<4x16xf32>
    %c4_13 = arith.constant 4 : index
    %c37_14 = arith.constant 37 : index
    %10 = vector.load %arg10[%c4_13, %c37_14] : memref<8x648xf32, #tpu.memory_space<vmem>>, vector<4x16xf32>
    tpu.vector_store %arg10[%c4_13, %c37_14], %9 {strides = array<i32>} : memref<8x648xf32, #tpu.memory_space<vmem>>, vector<4x16xf32>,
    %c0_15 = arith.constant 0 : index
    %c32 = arith.constant 32 : index
    %11 = vector.load %arg0[%c0_15, %c32] : memref<4x512xf32, #tpu.memory_space<vmem>>, vector<4x16xf32>
    %c0_16 = arith.constant 0 : index
    %c55 = arith.constant 55 : index
    %12 = vector.load %arg10[%c0_16, %c55] : memref<8x648xf32, #tpu.memory_space<vmem>>, vector<4x16xf32>
    tpu.vector_store %arg10[%c0_16, %c55], %11 {strides = array<i32>} : memref<8x648xf32, #tpu.memory_space<vmem>>, vector<4x16xf32>,
    %c0_17 = arith.constant 0 : index
    %c32_18 = arith.constant 32 : index
    %13 = vector.load %arg1[%c0_17, %c32_18] : memref<4x512xf32, #tpu.memory_space<vmem>>, vector<4x16xf32>
    %c4_19 = arith.constant 4 : index
    %c55_20 = arith.constant 55 : index
    %14 = vector.load %arg10[%c4_19, %c55_20] : memref<8x648xf32, #tpu.memory_space<vmem>>, vector<4x16xf32>
    tpu.vector_store %arg10[%c4_19, %c55_20], %13 {strides = array<i32>} : memref<8x648xf32, #tpu.memory_space<vmem>>, vector<4x16xf32>,
    %c0_21 = arith.constant 0 : index
    %c48 = arith.constant 48 : index
    %15 = vector.load %arg0[%c0_21, %c48] : memref<4x512xf32, #tpu.memory_space<vmem>>, vector<4x16xf32>
    %c0_22 = arith.constant 0 : index
    %c73 = arith.constant 73 : index
    %16 = vector.load %arg10[%c0_22, %c73] : memref<8x648xf32, #tpu.memory_space<vmem>>, vector<4x16xf32>
    tpu.vector_store %arg10[%c0_22, %c73], %15 {strides = array<i32>} : memref<8x648xf32, #tpu.memory_space<vmem>>, vector<4x16xf32>,
    %c0_23 = arith.constant 0 : index
    %c48_24 = arith.constant 48 : index
    %17 = vector.load %arg1[%c0_23, %c48_24] : memref<4x512xf32, #tpu.memory_space<vmem>>, vector<4x16xf32>
    %c4_25 = arith.constant 4 : index
    %c73_26 = arith.constant 73 : index
    %18 = vector.load %arg10[%c4_25, %c73_26] : memref<8x648xf32, #tpu.memory_space<vmem>>, vector<4x16xf32>
    tpu.vector_store %arg10[%c4_25, %c73_26], %17 {strides = array<i32>} : memref<8x648xf32, #tpu.memory_space<vmem>>, vector<4x16xf32>,
    %c0_27 = arith.constant 0 : index
    %c64 = arith.constant 64 : index
    %19 = vector.load %arg0[%c0_27, %c64] : memref<4x512xf32, #tpu.memory_space<vmem>>, vector<4x16xf32>
    %c0_28 = arith.constant 0 : index
    %c91 = arith.constant 91 : index
    %20 = vector.load %arg10[%c0_28, %c91] : memref<8x648xf32, #tpu.memory_space<vmem>>, vector<4x16xf32>
    tpu.vector_store %arg10[%c0_28, %c91], %19 {strides = array<i32>} : memref<8x648xf32, #tpu.memory_space<vmem>>, vector<4x16xf32>,
    %c0_29 = arith.constant 0 : index
    %c64_30 = arith.constant 64 : index
    %21 = vector.load %arg1[%c0_29, %c64_30] : memref<4x512xf32, #tpu.memory_space<vmem>>, vector<4x16xf32>
    %c4_31 = arith.constant 4 : index
    %c91_32 = arith.constant 91 : index
    %22 = vector.load %arg10[%c4_31, %c91_32] : memref<8x648xf32, #tpu.memory_space<vmem>>, vector<4x16xf32>
    tpu.vector_store %arg10[%c4_31, %c91_32], %21 {strides = array<i32>} : memref<8x648xf32, #tpu.memory_space<vmem>>, vector<4x16xf32>,
    %c0_33 = arith.constant 0 : index
    %c80 = arith.constant 80 : index
    %23 = vector.load %arg0[%c0_33, %c80] : memref<4x512xf32, #tpu.memory_space<vmem>>, vector<4x16xf32>
    %c0_34 = arith.constant 0 : index
    %c109 = arith.constant 109 : index
    %24 = vector.load %arg10[%c0_34, %c109] : memref<8x648xf32, #tpu.memory_space<vmem>>, vector<4x16xf32>
    tpu.vector_store %arg10[%c0_34, %c109], %23 {strides = array<i32>} : memref<8x648xf32, #tpu.memory_space<vmem>>, vector<4x16xf32>,
    %c0_35 = arith.constant 0 : index
    %c80_36 = arith.constant 80 : index
    %25 = vector.load %arg1[%c0_35, %c80_36] : memref<4x512xf32, #tpu.memory_space<vmem>>, vector<4x16xf32>
    %c4_37 = arith.constant 4 : index
    %c109_38 = arith.constant 109 : index
    %26 = vector.load %arg10[%c4_37, %c109_38] : memref<8x648xf32, #tpu.memory_space<vmem>>, vector<4x16xf32>
    tpu.vector_store %arg10[%c4_37, %c109_38], %25 {strides = array<i32>} : memref<8x648xf32, #tpu.memory_space<vmem>>, vector<4x16xf32>,
    %c0_39 = arith.constant 0 : index
    %c96 = arith.constant 96 : index
    %27 = vector.load %arg0[%c0_39, %c96] : memref<4x512xf32, #tpu.memory_space<vmem>>, vector<4x16xf32>
    %c0_40 = arith.constant 0 : index
    %c127 = arith.constant 127 : index
    %28 = vector.load %arg10[%c0_40, %c127] : memref<8x648xf32, #tpu.memory_space<vmem>>, vector<4x16xf32>
    tpu.vector_store %arg10[%c0_40, %c127], %27 {strides = array<i32>} : memref<8x648xf32, #tpu.memory_space<vmem>>, vector<4x16xf32>,
    %c0_41 = arith.constant 0 : index
    %c96_42 = arith.constant 96 : index
    %29 = vector.load %arg1[%c0_41, %c96_42] : memref<4x512xf32, #tpu.memory_space<vmem>>, vector<4x16xf32>
    %c4_43 = arith.constant 4 : index
    %c127_44 = arith.constant 127 : index
    %30 = vector.load %arg10[%c4_43, %c127_44] : memref<8x648xf32, #tpu.memory_space<vmem>>, vector<4x16xf32>
    tpu.vector_store %arg10[%c4_43, %c127_44], %29 {strides = array<i32>} : memref<8x648xf32, #tpu.memory_space<vmem>>, vector<4x16xf32>,
    %c0_45 = arith.constant 0 : index
    %c112 = arith.constant 112 : index
    %31 = vector.load %arg0[%c0_45, %c112] : memref<4x512xf32, #tpu.memory_space<vmem>>, vector<4x16xf32>
    %c0_46 = arith.constant 0 : index
    %c145 = arith.constant 145 : index
    %32 = vector.load %arg10[%c0_46, %c145] : memref<8x648xf32, #tpu.memory_space<vmem>>, vector<4x16xf32>
    tpu.vector_store %arg10[%c0_46, %c145], %31 {strides = array<i32>} : memref<8x648xf32, #tpu.memory_space<vmem>>, vector<4x16xf32>,
    %c0_47 = arith.constant 0 : index
    %c112_48 = arith.constant 112 : index
    %33 = vector.load %arg1[%c0_47, %c112_48] : memref<4x512xf32, #tpu.memory_space<vmem>>, vector<4x16xf32>
    %c4_49 = arith.constant 4 : index
    %c145_50 = arith.constant 145 : index
    %34 = vector.load %arg10[%c4_49, %c145_50] : memref<8x648xf32, #tpu.memory_space<vmem>>, vector<4x16xf32>
    tpu.vector_store %arg10[%c4_49, %c145_50], %33 {strides = array<i32>} : memref<8x648xf32, #tpu.memory_space<vmem>>, vector<4x16xf32>,
    %c0_51 = arith.constant 0 : index
    %c128 = arith.constant 128 : index
    %35 = vector.load %arg0[%c0_51, %c128] : memref<4x512xf32, #tpu.memory_space<vmem>>, vector<4x16xf32>
    %c0_52 = arith.constant 0 : index
    %c163 = arith.constant 163 : index
    %36 = vector.load %arg10[%c0_52, %c163] : memref<8x648xf32, #tpu.memory_space<vmem>>, vector<4x16xf32>
    tpu.vector_store %arg10[%c0_52, %c163], %35 {strides = array<i32>} : memref<8x648xf32, #tpu.memory_space<vmem>>, vector<4x16xf32>,
    %c0_53 = arith.constant 0 : index
    %c128_54 = arith.constant 128 : index
    %37 = vector.load %arg1[%c0_53, %c128_54] : memref<4x512xf32, #tpu.memory_space<vmem>>, vector<4x16xf32>
    %c4_55 = arith.constant 4 : index
    %c163_56 = arith.constant 163 : index
    %38 = vector.load %arg10[%c4_55, %c163_56] : memref<8x648xf32, #tpu.memory_space<vmem>>, vector<4x16xf32>
    tpu.vector_store %arg10[%c4_55, %c163_56], %37 {strides = array<i32>} : memref<8x648xf32, #tpu.memory_space<vmem>>, vector<4x16xf32>,
    %c0_57 = arith.constant 0 : index
    %c144 = arith.constant 144 : index
    %39 = vector.load %arg0[%c0_57, %c144] : memref<4x512xf32, #tpu.memory_space<vmem>>, vector<4x16xf32>
    %c0_58 = arith.constant 0 : index
    %c181 = arith.constant 181 : index
    %40 = vector.load %arg10[%c0_58, %c181] : memref<8x648xf32, #tpu.memory_space<vmem>>, vector<4x16xf32>
    tpu.vector_store %arg10[%c0_58, %c181], %39 {strides = array<i32>} : memref<8x648xf32, #tpu.memory_space<vmem>>, vector<4x16xf32>,
    %c0_59 = arith.constant 0 : index
    %c144_60 = arith.constant 144 : index
    %41 = vector.load %arg1[%c0_59, %c144_60] : memref<4x512xf32, #tpu.memory_space<vmem>>, vector<4x16xf32>
    %c4_61 = arith.constant 4 : index
    %c181_62 = arith.constant 181 : index
    %42 = vector.load %arg10[%c4_61, %c181_62] : memref<8x648xf32, #tpu.memory_space<vmem>>, vector<4x16xf32>
    tpu.vector_store %arg10[%c4_61, %c181_62], %41 {strides = array<i32>} : memref<8x648xf32, #tpu.memory_space<vmem>>, vector<4x16xf32>,
    %c0_63 = arith.constant 0 : index
    %c160 = arith.constant 160 : index
    %43 = vector.load %arg0[%c0_63, %c160] : memref<4x512xf32, #tpu.memory_space<vmem>>, vector<4x16xf32>
    %c0_64 = arith.constant 0 : index
    %c199 = arith.constant 199 : index
    %44 = vector.load %arg10[%c0_64, %c199] : memref<8x648xf32, #tpu.memory_space<vmem>>, vector<4x16xf32>
    tpu.vector_store %arg10[%c0_64, %c199], %43 {strides = array<i32>} : memref<8x648xf32, #tpu.memory_space<vmem>>, vector<4x16xf32>,
    %c0_65 = arith.constant 0 : index
    %c160_66 = arith.constant 160 : index
    %45 = vector.load %arg1[%c0_65, %c160_66] : memref<4x512xf32, #tpu.memory_space<vmem>>, vector<4x16xf32>
    %c4_67 = arith.constant 4 : index
    %c199_68 = arith.constant 199 : index
    %46 = vector.load %arg10[%c4_67, %c199_68] : memref<8x648xf32, #tpu.memory_space<vmem>>, vector<4x16xf32>
    tpu.vector_store %arg10[%c4_67, %c199_68], %45 {strides = array<i32>} : memref<8x648xf32, #tpu.memory_space<vmem>>, vector<4x16xf32>,
    %c0_69 = arith.constant 0 : index
    %c176 = arith.constant 176 : index
    %47 = vector.load %arg0[%c0_69, %c176] : memref<4x512xf32, #tpu.memory_space<vmem>>, vector<4x16xf32>
    %c0_70 = arith.constant 0 : index
    %c217 = arith.constant 217 : index
    %48 = vector.load %arg10[%c0_70, %c217] : memref<8x648xf32, #tpu.memory_space<vmem>>, vector<4x16xf32>
    tpu.vector_store %arg10[%c0_70, %c217], %47 {strides = array<i32>} : memref<8x648xf32, #tpu.memory_space<vmem>>, vector<4x16xf32>,
    %c0_71 = arith.constant 0 : index
    %c176_72 = arith.constant 176 : index
    %49 = vector.load %arg1[%c0_71, %c176_72] : memref<4x512xf32, #tpu.memory_space<vmem>>, vector<4x16xf32>
    %c4_73 = arith.constant 4 : index
    %c217_74 = arith.constant 217 : index
    %50 = vector.load %arg10[%c4_73, %c217_74] : memref<8x648xf32, #tpu.memory_space<vmem>>, vector<4x16xf32>
    tpu.vector_store %arg10[%c4_73, %c217_74], %49 {strides = array<i32>} : memref<8x648xf32, #tpu.memory_space<vmem>>, vector<4x16xf32>,
    %c0_75 = arith.constant 0 : index
    %c192 = arith.constant 192 : index
    %51 = vector.load %arg0[%c0_75, %c192] : memref<4x512xf32, #tpu.memory_space<vmem>>, vector<4x16xf32>
    %c0_76 = arith.constant 0 : index
    %c235 = arith.constant 235 : index
    %52 = vector.load %arg10[%c0_76, %c235] : memref<8x648xf32, #tpu.memory_space<vmem>>, vector<4x16xf32>
    tpu.vector_store %arg10[%c0_76, %c235], %51 {strides = array<i32>} : memref<8x648xf32, #tpu.memory_space<vmem>>, vector<4x16xf32>,
    %c0_77 = arith.constant 0 : index
    %c192_78 = arith.constant 192 : index
    %53 = vector.load %arg1[%c0_77, %c192_78] : memref<4x512xf32, #tpu.memory_space<vmem>>, vector<4x16xf32>
    %c4_79 = arith.constant 4 : index
    %c235_80 = arith.constant 235 : index
    %54 = vector.load %arg10[%c4_79, %c235_80] : memref<8x648xf32, #tpu.memory_space<vmem>>, vector<4x16xf32>
    tpu.vector_store %arg10[%c4_79, %c235_80], %53 {strides = array<i32>} : memref<8x648xf32, #tpu.memory_space<vmem>>, vector<4x16xf32>,
    %c0_81 = arith.constant 0 : index
    %c208 = arith.constant 208 : index
    %55 = vector.load %arg0[%c0_81, %c208] : memref<4x512xf32, #tpu.memory_space<vmem>>, vector<4x16xf32>
    %c0_82 = arith.constant 0 : index
    %c253 = arith.constant 253 : index
    %56 = vector.load %arg10[%c0_82, %c253] : memref<8x648xf32, #tpu.memory_space<vmem>>, vector<4x16xf32>
    tpu.vector_store %arg10[%c0_82, %c253], %55 {strides = array<i32>} : memref<8x648xf32, #tpu.memory_space<vmem>>, vector<4x16xf32>,
    %c0_83 = arith.constant 0 : index
    %c208_84 = arith.constant 208 : index
    %57 = vector.load %arg1[%c0_83, %c208_84] : memref<4x512xf32, #tpu.memory_space<vmem>>, vector<4x16xf32>
    %c4_85 = arith.constant 4 : index
    %c253_86 = arith.constant 253 : index
    %58 = vector.load %arg10[%c4_85, %c253_86] : memref<8x648xf32, #tpu.memory_space<vmem>>, vector<4x16xf32>
    tpu.vector_store %arg10[%c4_85, %c253_86], %57 {strides = array<i32>} : memref<8x648xf32, #tpu.memory_space<vmem>>, vector<4x16xf32>,
    %c0_87 = arith.constant 0 : index
    %c224 = arith.constant 224 : index
    %59 = vector.load %arg0[%c0_87, %c224] : memref<4x512xf32, #tpu.memory_space<vmem>>, vector<4x16xf32>
    %c0_88 = arith.constant 0 : index
    %c271 = arith.constant 271 : index
    %60 = vector.load %arg10[%c0_88, %c271] : memref<8x648xf32, #tpu.memory_space<vmem>>, vector<4x16xf32>
    tpu.vector_store %arg10[%c0_88, %c271], %59 {strides = array<i32>} : memref<8x648xf32, #tpu.memory_space<vmem>>, vector<4x16xf32>,
    %c0_89 = arith.constant 0 : index
    %c224_90 = arith.constant 224 : index
    %61 = vector.load %arg1[%c0_89, %c224_90] : memref<4x512xf32, #tpu.memory_space<vmem>>, vector<4x16xf32>
    %c4_91 = arith.constant 4 : index
    %c271_92 = arith.constant 271 : index
    %62 = vector.load %arg10[%c4_91, %c271_92] : memref<8x648xf32, #tpu.memory_space<vmem>>, vector<4x16xf32>
    tpu.vector_store %arg10[%c4_91, %c271_92], %61 {strides = array<i32>} : memref<8x648xf32, #tpu.memory_space<vmem>>, vector<4x16xf32>,
    %c0_93 = arith.constant 0 : index
    %c240 = arith.constant 240 : index
    %63 = vector.load %arg0[%c0_93, %c240] : memref<4x512xf32, #tpu.memory_space<vmem>>, vector<4x16xf32>
    %c0_94 = arith.constant 0 : index
    %c289 = arith.constant 289 : index
    %64 = vector.load %arg10[%c0_94, %c289] : memref<8x648xf32, #tpu.memory_space<vmem>>, vector<4x16xf32>
    tpu.vector_store %arg10[%c0_94, %c289], %63 {strides = array<i32>} : memref<8x648xf32, #tpu.memory_space<vmem>>, vector<4x16xf32>,
    %c0_95 = arith.constant 0 : index
    %c240_96 = arith.constant 240 : index
    %65 = vector.load %arg1[%c0_95, %c240_96] : memref<4x512xf32, #tpu.memory_space<vmem>>, vector<4x16xf32>
    %c4_97 = arith.constant 4 : index
    %c289_98 = arith.constant 289 : index
    %66 = vector.load %arg10[%c4_97, %c289_98] : memref<8x648xf32, #tpu.memory_space<vmem>>, vector<4x16xf32>
    tpu.vector_store %arg10[%c4_97, %c289_98], %65 {strides = array<i32>} : memref<8x648xf32, #tpu.memory_space<vmem>>, vector<4x16xf32>,
    %c0_99 = arith.constant 0 : index
    %c256 = arith.constant 256 : index
    %67 = vector.load %arg0[%c0_99, %c256] : memref<4x512xf32, #tpu.memory_space<vmem>>, vector<4x16xf32>
    %c0_100 = arith.constant 0 : index
    %c343 = arith.constant 343 : index
    %68 = vector.load %arg10[%c0_100, %c343] : memref<8x648xf32, #tpu.memory_space<vmem>>, vector<4x16xf32>
    tpu.vector_store %arg10[%c0_100, %c343], %67 {strides = array<i32>} : memref<8x648xf32, #tpu.memory_space<vmem>>, vector<4x16xf32>,
    %c0_101 = arith.constant 0 : index
    %c256_102 = arith.constant 256 : index
    %69 = vector.load %arg1[%c0_101, %c256_102] : memref<4x512xf32, #tpu.memory_space<vmem>>, vector<4x16xf32>
    %c4_103 = arith.constant 4 : index
    %c343_104 = arith.constant 343 : index
    %70 = vector.load %arg10[%c4_103, %c343_104] : memref<8x648xf32, #tpu.memory_space<vmem>>, vector<4x16xf32>
    tpu.vector_store %arg10[%c4_103, %c343_104], %69 {strides = array<i32>} : memref<8x648xf32, #tpu.memory_space<vmem>>, vector<4x16xf32>,
    %c0_105 = arith.constant 0 : index
    %c272 = arith.constant 272 : index
    %71 = vector.load %arg0[%c0_105, %c272] : memref<4x512xf32, #tpu.memory_space<vmem>>, vector<4x16xf32>
    %c0_106 = arith.constant 0 : index
    %c361 = arith.constant 361 : index
    %72 = vector.load %arg10[%c0_106, %c361] : memref<8x648xf32, #tpu.memory_space<vmem>>, vector<4x16xf32>
    tpu.vector_store %arg10[%c0_106, %c361], %71 {strides = array<i32>} : memref<8x648xf32, #tpu.memory_space<vmem>>, vector<4x16xf32>,
    %c0_107 = arith.constant 0 : index
    %c272_108 = arith.constant 272 : index
    %73 = vector.load %arg1[%c0_107, %c272_108] : memref<4x512xf32, #tpu.memory_space<vmem>>, vector<4x16xf32>
    %c4_109 = arith.constant 4 : index
    %c361_110 = arith.constant 361 : index
    %74 = vector.load %arg10[%c4_109, %c361_110] : memref<8x648xf32, #tpu.memory_space<vmem>>, vector<4x16xf32>
    tpu.vector_store %arg10[%c4_109, %c361_110], %73 {strides = array<i32>} : memref<8x648xf32, #tpu.memory_space<vmem>>, vector<4x16xf32>,
    %c0_111 = arith.constant 0 : index
    %c288 = arith.constant 288 : index
    %75 = vector.load %arg0[%c0_111, %c288] : memref<4x512xf32, #tpu.memory_space<vmem>>, vector<4x16xf32>
    %c0_112 = arith.constant 0 : index
    %c379 = arith.constant 379 : index
    %76 = vector.load %arg10[%c0_112, %c379] : memref<8x648xf32, #tpu.memory_space<vmem>>, vector<4x16xf32>
    tpu.vector_store %arg10[%c0_112, %c379], %75 {strides = array<i32>} : memref<8x648xf32, #tpu.memory_space<vmem>>, vector<4x16xf32>,
    %c0_113 = arith.constant 0 : index
    %c288_114 = arith.constant 288 : index
    %77 = vector.load %arg1[%c0_113, %c288_114] : memref<4x512xf32, #tpu.memory_space<vmem>>, vector<4x16xf32>
    %c4_115 = arith.constant 4 : index
    %c379_116 = arith.constant 379 : index
    %78 = vector.load %arg10[%c4_115, %c379_116] : memref<8x648xf32, #tpu.memory_space<vmem>>, vector<4x16xf32>
    tpu.vector_store %arg10[%c4_115, %c379_116], %77 {strides = array<i32>} : memref<8x648xf32, #tpu.memory_space<vmem>>, vector<4x16xf32>,
    %c0_117 = arith.constant 0 : index
    %c304 = arith.constant 304 : index
    %79 = vector.load %arg0[%c0_117, %c304] : memref<4x512xf32, #tpu.memory_space<vmem>>, vector<4x16xf32>
    %c0_118 = arith.constant 0 : index
    %c397 = arith.constant 397 : index
    %80 = vector.load %arg10[%c0_118, %c397] : memref<8x648xf32, #tpu.memory_space<vmem>>, vector<4x16xf32>
    tpu.vector_store %arg10[%c0_118, %c397], %79 {strides = array<i32>} : memref<8x648xf32, #tpu.memory_space<vmem>>, vector<4x16xf32>,
    %c0_119 = arith.constant 0 : index
    %c304_120 = arith.constant 304 : index
    %81 = vector.load %arg1[%c0_119, %c304_120] : memref<4x512xf32, #tpu.memory_space<vmem>>, vector<4x16xf32>
    %c4_121 = arith.constant 4 : index
    %c397_122 = arith.constant 397 : index
    %82 = vector.load %arg10[%c4_121, %c397_122] : memref<8x648xf32, #tpu.memory_space<vmem>>, vector<4x16xf32>
    tpu.vector_store %arg10[%c4_121, %c397_122], %81 {strides = array<i32>} : memref<8x648xf32, #tpu.memory_space<vmem>>, vector<4x16xf32>,
    %c0_123 = arith.constant 0 : index
    %c320 = arith.constant 320 : index
    %83 = vector.load %arg0[%c0_123, %c320] : memref<4x512xf32, #tpu.memory_space<vmem>>, vector<4x16xf32>
    %c0_124 = arith.constant 0 : index
    %c415 = arith.constant 415 : index
    %84 = vector.load %arg10[%c0_124, %c415] : memref<8x648xf32, #tpu.memory_space<vmem>>, vector<4x16xf32>
    tpu.vector_store %arg10[%c0_124, %c415], %83 {strides = array<i32>} : memref<8x648xf32, #tpu.memory_space<vmem>>, vector<4x16xf32>,
    %c0_125 = arith.constant 0 : index
    %c320_126 = arith.constant 320 : index
    %85 = vector.load %arg1[%c0_125, %c320_126] : memref<4x512xf32, #tpu.memory_space<vmem>>, vector<4x16xf32>
    %c4_127 = arith.constant 4 : index
    %c415_128 = arith.constant 415 : index
    %86 = vector.load %arg10[%c4_127, %c415_128] : memref<8x648xf32, #tpu.memory_space<vmem>>, vector<4x16xf32>
    tpu.vector_store %arg10[%c4_127, %c415_128], %85 {strides = array<i32>} : memref<8x648xf32, #tpu.memory_space<vmem>>, vector<4x16xf32>,
    %c0_129 = arith.constant 0 : index
    %c336 = arith.constant 336 : index
    %87 = vector.load %arg0[%c0_129, %c336] : memref<4x512xf32, #tpu.memory_space<vmem>>, vector<4x16xf32>
    %c0_130 = arith.constant 0 : index
    %c433 = arith.constant 433 : index
    %88 = vector.load %arg10[%c0_130, %c433] : memref<8x648xf32, #tpu.memory_space<vmem>>, vector<4x16xf32>
    tpu.vector_store %arg10[%c0_130, %c433], %87 {strides = array<i32>} : memref<8x648xf32, #tpu.memory_space<vmem>>, vector<4x16xf32>,
    %c0_131 = arith.constant 0 : index
    %c336_132 = arith.constant 336 : index
    %89 = vector.load %arg1[%c0_131, %c336_132] : memref<4x512xf32, #tpu.memory_space<vmem>>, vector<4x16xf32>
    %c4_133 = arith.constant 4 : index
    %c433_134 = arith.constant 433 : index
    %90 = vector.load %arg10[%c4_133, %c433_134] : memref<8x648xf32, #tpu.memory_space<vmem>>, vector<4x16xf32>
    tpu.vector_store %arg10[%c4_133, %c433_134], %89 {strides = array<i32>} : memref<8x648xf32, #tpu.memory_space<vmem>>, vector<4x16xf32>,
    %c0_135 = arith.constant 0 : index
    %c352 = arith.constant 352 : index
    %91 = vector.load %arg0[%c0_135, %c352] : memref<4x512xf32, #tpu.memory_space<vmem>>, vector<4x16xf32>
    %c0_136 = arith.constant 0 : index
    %c451 = arith.constant 451 : index
    %92 = vector.load %arg10[%c0_136, %c451] : memref<8x648xf32, #tpu.memory_space<vmem>>, vector<4x16xf32>
    tpu.vector_store %arg10[%c0_136, %c451], %91 {strides = array<i32>} : memref<8x648xf32, #tpu.memory_space<vmem>>, vector<4x16xf32>,
    %c0_137 = arith.constant 0 : index
    %c352_138 = arith.constant 352 : index
    %93 = vector.load %arg1[%c0_137, %c352_138] : memref<4x512xf32, #tpu.memory_space<vmem>>, vector<4x16xf32>
    %c4_139 = arith.constant 4 : index
    %c451_140 = arith.constant 451 : index
    %94 = vector.load %arg10[%c4_139, %c451_140] : memref<8x648xf32, #tpu.memory_space<vmem>>, vector<4x16xf32>
    tpu.vector_store %arg10[%c4_139, %c451_140], %93 {strides = array<i32>} : memref<8x648xf32, #tpu.memory_space<vmem>>, vector<4x16xf32>,
    %c0_141 = arith.constant 0 : index
    %c368 = arith.constant 368 : index
    %95 = vector.load %arg0[%c0_141, %c368] : memref<4x512xf32, #tpu.memory_space<vmem>>, vector<4x16xf32>
    %c0_142 = arith.constant 0 : index
    %c469 = arith.constant 469 : index
    %96 = vector.load %arg10[%c0_142, %c469] : memref<8x648xf32, #tpu.memory_space<vmem>>, vector<4x16xf32>
    tpu.vector_store %arg10[%c0_142, %c469], %95 {strides = array<i32>} : memref<8x648xf32, #tpu.memory_space<vmem>>, vector<4x16xf32>,
    %c0_143 = arith.constant 0 : index
    %c368_144 = arith.constant 368 : index
    %97 = vector.load %arg1[%c0_143, %c368_144] : memref<4x512xf32, #tpu.memory_space<vmem>>, vector<4x16xf32>
    %c4_145 = arith.constant 4 : index
    %c469_146 = arith.constant 469 : index
    %98 = vector.load %arg10[%c4_145, %c469_146] : memref<8x648xf32, #tpu.memory_space<vmem>>, vector<4x16xf32>
    tpu.vector_store %arg10[%c4_145, %c469_146], %97 {strides = array<i32>} : memref<8x648xf32, #tpu.memory_space<vmem>>, vector<4x16xf32>,
    %c0_147 = arith.constant 0 : index
    %c384 = arith.constant 384 : index
    %99 = vector.load %arg0[%c0_147, %c384] : memref<4x512xf32, #tpu.memory_space<vmem>>, vector<4x16xf32>
    %c0_148 = arith.constant 0 : index
    %c487 = arith.constant 487 : index
    %100 = vector.load %arg10[%c0_148, %c487] : memref<8x648xf32, #tpu.memory_space<vmem>>, vector<4x16xf32>
    tpu.vector_store %arg10[%c0_148, %c487], %99 {strides = array<i32>} : memref<8x648xf32, #tpu.memory_space<vmem>>, vector<4x16xf32>,
    %c0_149 = arith.constant 0 : index
    %c384_150 = arith.constant 384 : index
    %101 = vector.load %arg1[%c0_149, %c384_150] : memref<4x512xf32, #tpu.memory_space<vmem>>, vector<4x16xf32>
    %c4_151 = arith.constant 4 : index
    %c487_152 = arith.constant 487 : index
    %102 = vector.load %arg10[%c4_151, %c487_152] : memref<8x648xf32, #tpu.memory_space<vmem>>, vector<4x16xf32>
    tpu.vector_store %arg10[%c4_151, %c487_152], %101 {strides = array<i32>} : memref<8x648xf32, #tpu.memory_space<vmem>>, vector<4x16xf32>,
    %c0_153 = arith.constant 0 : index
    %c400 = arith.constant 400 : index
    %103 = vector.load %arg0[%c0_153, %c400] : memref<4x512xf32, #tpu.memory_space<vmem>>, vector<4x16xf32>
    %c0_154 = arith.constant 0 : index
    %c505 = arith.constant 505 : index
    %104 = vector.load %arg10[%c0_154, %c505] : memref<8x648xf32, #tpu.memory_space<vmem>>, vector<4x16xf32>
    tpu.vector_store %arg10[%c0_154, %c505], %103 {strides = array<i32>} : memref<8x648xf32, #tpu.memory_space<vmem>>, vector<4x16xf32>,
    %c0_155 = arith.constant 0 : index
    %c400_156 = arith.constant 400 : index
    %105 = vector.load %arg1[%c0_155, %c400_156] : memref<4x512xf32, #tpu.memory_space<vmem>>, vector<4x16xf32>
    %c4_157 = arith.constant 4 : index
    %c505_158 = arith.constant 505 : index
    %106 = vector.load %arg10[%c4_157, %c505_158] : memref<8x648xf32, #tpu.memory_space<vmem>>, vector<4x16xf32>
    tpu.vector_store %arg10[%c4_157, %c505_158], %105 {strides = array<i32>} : memref<8x648xf32, #tpu.memory_space<vmem>>, vector<4x16xf32>,
    %c0_159 = arith.constant 0 : index
    %c416 = arith.constant 416 : index
    %107 = vector.load %arg0[%c0_159, %c416] : memref<4x512xf32, #tpu.memory_space<vmem>>, vector<4x16xf32>
    %c0_160 = arith.constant 0 : index
    %c523 = arith.constant 523 : index
    %108 = vector.load %arg10[%c0_160, %c523] : memref<8x648xf32, #tpu.memory_space<vmem>>, vector<4x16xf32>
    tpu.vector_store %arg10[%c0_160, %c523], %107 {strides = array<i32>} : memref<8x648xf32, #tpu.memory_space<vmem>>, vector<4x16xf32>,
    %c0_161 = arith.constant 0 : index
    %c416_162 = arith.constant 416 : index
    %109 = vector.load %arg1[%c0_161, %c416_162] : memref<4x512xf32, #tpu.memory_space<vmem>>, vector<4x16xf32>
    %c4_163 = arith.constant 4 : index
    %c523_164 = arith.constant 523 : index
    %110 = vector.load %arg10[%c4_163, %c523_164] : memref<8x648xf32, #tpu.memory_space<vmem>>, vector<4x16xf32>
    tpu.vector_store %arg10[%c4_163, %c523_164], %109 {strides = array<i32>} : memref<8x648xf32, #tpu.memory_space<vmem>>, vector<4x16xf32>,
    %c0_165 = arith.constant 0 : index
    %c432 = arith.constant 432 : index
    %111 = vector.load %arg0[%c0_165, %c432] : memref<4x512xf32, #tpu.memory_space<vmem>>, vector<4x16xf32>
    %c0_166 = arith.constant 0 : index
    %c541 = arith.constant 541 : index
    %112 = vector.load %arg10[%c0_166, %c541] : memref<8x648xf32, #tpu.memory_space<vmem>>, vector<4x16xf32>
    tpu.vector_store %arg10[%c0_166, %c541], %111 {strides = array<i32>} : memref<8x648xf32, #tpu.memory_space<vmem>>, vector<4x16xf32>,
    %c0_167 = arith.constant 0 : index
    %c432_168 = arith.constant 432 : index
    %113 = vector.load %arg1[%c0_167, %c432_168] : memref<4x512xf32, #tpu.memory_space<vmem>>, vector<4x16xf32>
    %c4_169 = arith.constant 4 : index
    %c541_170 = arith.constant 541 : index
    %114 = vector.load %arg10[%c4_169, %c541_170] : memref<8x648xf32, #tpu.memory_space<vmem>>, vector<4x16xf32>
    tpu.vector_store %arg10[%c4_169, %c541_170], %113 {strides = array<i32>} : memref<8x648xf32, #tpu.memory_space<vmem>>, vector<4x16xf32>,
    %c0_171 = arith.constant 0 : index
    %c448 = arith.constant 448 : index
    %115 = vector.load %arg0[%c0_171, %c448] : memref<4x512xf32, #tpu.memory_space<vmem>>, vector<4x16xf32>
    %c0_172 = arith.constant 0 : index
    %c559 = arith.constant 559 : index
    %116 = vector.load %arg10[%c0_172, %c559] : memref<8x648xf32, #tpu.memory_space<vmem>>, vector<4x16xf32>
    tpu.vector_store %arg10[%c0_172, %c559], %115 {strides = array<i32>} : memref<8x648xf32, #tpu.memory_space<vmem>>, vector<4x16xf32>,
    %c0_173 = arith.constant 0 : index
    %c448_174 = arith.constant 448 : index
    %117 = vector.load %arg1[%c0_173, %c448_174] : memref<4x512xf32, #tpu.memory_space<vmem>>, vector<4x16xf32>
    %c4_175 = arith.constant 4 : index
    %c559_176 = arith.constant 559 : index
    %118 = vector.load %arg10[%c4_175, %c559_176] : memref<8x648xf32, #tpu.memory_space<vmem>>, vector<4x16xf32>
    tpu.vector_store %arg10[%c4_175, %c559_176], %117 {strides = array<i32>} : memref<8x648xf32, #tpu.memory_space<vmem>>, vector<4x16xf32>,
    %c0_177 = arith.constant 0 : index
    %c464 = arith.constant 464 : index
    %119 = vector.load %arg0[%c0_177, %c464] : memref<4x512xf32, #tpu.memory_space<vmem>>, vector<4x16xf32>
    %c0_178 = arith.constant 0 : index
    %c577 = arith.constant 577 : index
    %120 = vector.load %arg10[%c0_178, %c577] : memref<8x648xf32, #tpu.memory_space<vmem>>, vector<4x16xf32>
    tpu.vector_store %arg10[%c0_178, %c577], %119 {strides = array<i32>} : memref<8x648xf32, #tpu.memory_space<vmem>>, vector<4x16xf32>,
    %c0_179 = arith.constant 0 : index
    %c464_180 = arith.constant 464 : index
    %121 = vector.load %arg1[%c0_179, %c464_180] : memref<4x512xf32, #tpu.memory_space<vmem>>, vector<4x16xf32>
    %c4_181 = arith.constant 4 : index
    %c577_182 = arith.constant 577 : index
    %122 = vector.load %arg10[%c4_181, %c577_182] : memref<8x648xf32, #tpu.memory_space<vmem>>, vector<4x16xf32>
    tpu.vector_store %arg10[%c4_181, %c577_182], %121 {strides = array<i32>} : memref<8x648xf32, #tpu.memory_space<vmem>>, vector<4x16xf32>,
    %c0_183 = arith.constant 0 : index
    %c480 = arith.constant 480 : index
    %123 = vector.load %arg0[%c0_183, %c480] : memref<4x512xf32, #tpu.memory_space<vmem>>, vector<4x16xf32>
    %c0_184 = arith.constant 0 : index
    %c595 = arith.constant 595 : index
    %124 = vector.load %arg10[%c0_184, %c595] : memref<8x648xf32, #tpu.memory_space<vmem>>, vector<4x16xf32>
    tpu.vector_store %arg10[%c0_184, %c595], %123 {strides = array<i32>} : memref<8x648xf32, #tpu.memory_space<vmem>>, vector<4x16xf32>,
    %c0_185 = arith.constant 0 : index
    %c480_186 = arith.constant 480 : index
    %125 = vector.load %arg1[%c0_185, %c480_186] : memref<4x512xf32, #tpu.memory_space<vmem>>, vector<4x16xf32>
    %c4_187 = arith.constant 4 : index
    %c595_188 = arith.constant 595 : index
    %126 = vector.load %arg10[%c4_187, %c595_188] : memref<8x648xf32, #tpu.memory_space<vmem>>, vector<4x16xf32>
    tpu.vector_store %arg10[%c4_187, %c595_188], %125 {strides = array<i32>} : memref<8x648xf32, #tpu.memory_space<vmem>>, vector<4x16xf32>,
    %c0_189 = arith.constant 0 : index
    %c496 = arith.constant 496 : index
    %127 = vector.load %arg0[%c0_189, %c496] : memref<4x512xf32, #tpu.memory_space<vmem>>, vector<4x16xf32>
    %c0_190 = arith.constant 0 : index
    %c613 = arith.constant 613 : index
    %128 = vector.load %arg10[%c0_190, %c613] : memref<8x648xf32, #tpu.memory_space<vmem>>, vector<4x16xf32>
    tpu.vector_store %arg10[%c0_190, %c613], %127 {strides = array<i32>} : memref<8x648xf32, #tpu.memory_space<vmem>>, vector<4x16xf32>,
    %c0_191 = arith.constant 0 : index
    %c496_192 = arith.constant 496 : index
    %129 = vector.load %arg1[%c0_191, %c496_192] : memref<4x512xf32, #tpu.memory_space<vmem>>, vector<4x16xf32>
    %c4_193 = arith.constant 4 : index
    %c613_194 = arith.constant 613 : index
    %130 = vector.load %arg10[%c4_193, %c613_194] : memref<8x648xf32, #tpu.memory_space<vmem>>, vector<4x16xf32>
    tpu.vector_store %arg10[%c4_193, %c613_194], %129 {strides = array<i32>} : memref<8x648xf32, #tpu.memory_space<vmem>>, vector<4x16xf32>,
    %c0_195 = arith.constant 0 : index
    %c0_196 = arith.constant 0 : index
    %c0_197 = arith.constant 0 : index
    %131 = vector.load %arg3[%c0_195, %c0_196, %c0_197] : memref<9x8x8xf32, #tpu.memory_space<vmem>>, vector<1x8x8xf32>
    %132 = vector.shape_cast %131 : vector<1x8x8xf32> to vector<8x8xf32>
    %c0_198 = arith.constant 0 : index
    %c0_199 = arith.constant 0 : index
    %133 = vector.load %arg10[%c0_198, %c0_199] : memref<8x648xf32, #tpu.memory_space<vmem>>, vector<8x610xf32>
    %cst_200 = arith.constant dense<0.000000e+00> : vector<8x610xf32>
    %134 = tpu.matmul %132, %133, %cst_200 {dimension_numbers = #tpu.dot_dimension_numbers<[1], [0], [0], [1], [0, 0, 1, 1], [], []>} : vector<8x8xf32>, vector<8x610xf32>, vector<8x610xf32> -> vector<8x610xf32>
    %c1 = arith.constant 1 : index
    %c0_201 = arith.constant 0 : index
    %c0_202 = arith.constant 0 : index
    %135 = vector.load %arg3[%c1, %c0_201, %c0_202] : memref<9x8x8xf32, #tpu.memory_space<vmem>>, vector<1x8x8xf32>
    %136 = vector.shape_cast %135 : vector<1x8x8xf32> to vector<8x8xf32>
    %c0_203 = arith.constant 0 : index
    %c1_204 = arith.constant 1 : index
    %137 = vector.load %arg10[%c0_203, %c1_204] : memref<8x648xf32, #tpu.memory_space<vmem>>, vector<8x610xf32>
    %cst_205 = arith.constant dense<0.000000e+00> : vector<8x610xf32>
    %138 = tpu.matmul %136, %137, %cst_205 {dimension_numbers = #tpu.dot_dimension_numbers<[1], [0], [0], [1], [0, 0, 1, 1], [], []>} : vector<8x8xf32>, vector<8x610xf32>, vector<8x610xf32> -> vector<8x610xf32>
    %139 = arith.addf %134, %138 : vector<8x610xf32>
    %c2 = arith.constant 2 : index
    %c0_206 = arith.constant 0 : index
    %c0_207 = arith.constant 0 : index
    %140 = vector.load %arg3[%c2, %c0_206, %c0_207] : memref<9x8x8xf32, #tpu.memory_space<vmem>>, vector<1x8x8xf32>
    %141 = vector.shape_cast %140 : vector<1x8x8xf32> to vector<8x8xf32>
    %c0_208 = arith.constant 0 : index
    %c2_209 = arith.constant 2 : index
    %142 = vector.load %arg10[%c0_208, %c2_209] : memref<8x648xf32, #tpu.memory_space<vmem>>, vector<8x610xf32>
    %cst_210 = arith.constant dense<0.000000e+00> : vector<8x610xf32>
    %143 = tpu.matmul %141, %142, %cst_210 {dimension_numbers = #tpu.dot_dimension_numbers<[1], [0], [0], [1], [0, 0, 1, 1], [], []>} : vector<8x8xf32>, vector<8x610xf32>, vector<8x610xf32> -> vector<8x610xf32>
    %144 = arith.addf %139, %143 : vector<8x610xf32>
    %c3 = arith.constant 3 : index
    %c0_211 = arith.constant 0 : index
    %c0_212 = arith.constant 0 : index
    %145 = vector.load %arg3[%c3, %c0_211, %c0_212] : memref<9x8x8xf32, #tpu.memory_space<vmem>>, vector<1x8x8xf32>
    %146 = vector.shape_cast %145 : vector<1x8x8xf32> to vector<8x8xf32>
    %c0_213 = arith.constant 0 : index
    %c18 = arith.constant 18 : index
    %147 = vector.load %arg10[%c0_213, %c18] : memref<8x648xf32, #tpu.memory_space<vmem>>, vector<8x610xf32>
    %cst_214 = arith.constant dense<0.000000e+00> : vector<8x610xf32>
    %148 = tpu.matmul %146, %147, %cst_214 {dimension_numbers = #tpu.dot_dimension_numbers<[1], [0], [0], [1], [0, 0, 1, 1], [], []>} : vector<8x8xf32>, vector<8x610xf32>, vector<8x610xf32> -> vector<8x610xf32>
    %149 = arith.addf %144, %148 : vector<8x610xf32>
    %c4_215 = arith.constant 4 : index
    %c0_216 = arith.constant 0 : index
    %c0_217 = arith.constant 0 : index
    %150 = vector.load %arg3[%c4_215, %c0_216, %c0_217] : memref<9x8x8xf32, #tpu.memory_space<vmem>>, vector<1x8x8xf32>
    %151 = vector.shape_cast %150 : vector<1x8x8xf32> to vector<8x8xf32>
    %c0_218 = arith.constant 0 : index
    %c19_219 = arith.constant 19 : index
    %152 = vector.load %arg10[%c0_218, %c19_219] : memref<8x648xf32, #tpu.memory_space<vmem>>, vector<8x610xf32>
    %cst_220 = arith.constant dense<0.000000e+00> : vector<8x610xf32>
    %153 = tpu.matmul %151, %152, %cst_220 {dimension_numbers = #tpu.dot_dimension_numbers<[1], [0], [0], [1], [0, 0, 1, 1], [], []>} : vector<8x8xf32>, vector<8x610xf32>, vector<8x610xf32> -> vector<8x610xf32>
    %154 = arith.addf %149, %153 : vector<8x610xf32>
    %c5 = arith.constant 5 : index
    %c0_221 = arith.constant 0 : index
    %c0_222 = arith.constant 0 : index
    %155 = vector.load %arg3[%c5, %c0_221, %c0_222] : memref<9x8x8xf32, #tpu.memory_space<vmem>>, vector<1x8x8xf32>
    %156 = vector.shape_cast %155 : vector<1x8x8xf32> to vector<8x8xf32>
    %c0_223 = arith.constant 0 : index
    %c20 = arith.constant 20 : index
    %157 = vector.load %arg10[%c0_223, %c20] : memref<8x648xf32, #tpu.memory_space<vmem>>, vector<8x610xf32>
    %cst_224 = arith.constant dense<0.000000e+00> : vector<8x610xf32>
    %158 = tpu.matmul %156, %157, %cst_224 {dimension_numbers = #tpu.dot_dimension_numbers<[1], [0], [0], [1], [0, 0, 1, 1], [], []>} : vector<8x8xf32>, vector<8x610xf32>, vector<8x610xf32> -> vector<8x610xf32>
    %159 = arith.addf %154, %158 : vector<8x610xf32>
    %c6 = arith.constant 6 : index
    %c0_225 = arith.constant 0 : index
    %c0_226 = arith.constant 0 : index
    %160 = vector.load %arg3[%c6, %c0_225, %c0_226] : memref<9x8x8xf32, #tpu.memory_space<vmem>>, vector<1x8x8xf32>
    %161 = vector.shape_cast %160 : vector<1x8x8xf32> to vector<8x8xf32>
    %c0_227 = arith.constant 0 : index
    %c36 = arith.constant 36 : index
    %162 = vector.load %arg10[%c0_227, %c36] : memref<8x648xf32, #tpu.memory_space<vmem>>, vector<8x610xf32>
    %cst_228 = arith.constant dense<0.000000e+00> : vector<8x610xf32>
    %163 = tpu.matmul %161, %162, %cst_228 {dimension_numbers = #tpu.dot_dimension_numbers<[1], [0], [0], [1], [0, 0, 1, 1], [], []>} : vector<8x8xf32>, vector<8x610xf32>, vector<8x610xf32> -> vector<8x610xf32>
    %164 = arith.addf %159, %163 : vector<8x610xf32>
    %c7 = arith.constant 7 : index
    %c0_229 = arith.constant 0 : index
    %c0_230 = arith.constant 0 : index
    %165 = vector.load %arg3[%c7, %c0_229, %c0_230] : memref<9x8x8xf32, #tpu.memory_space<vmem>>, vector<1x8x8xf32>
    %166 = vector.shape_cast %165 : vector<1x8x8xf32> to vector<8x8xf32>
    %c0_231 = arith.constant 0 : index
    %c37_232 = arith.constant 37 : index
    %167 = vector.load %arg10[%c0_231, %c37_232] : memref<8x648xf32, #tpu.memory_space<vmem>>, vector<8x610xf32>
    %cst_233 = arith.constant dense<0.000000e+00> : vector<8x610xf32>
    %168 = tpu.matmul %166, %167, %cst_233 {dimension_numbers = #tpu.dot_dimension_numbers<[1], [0], [0], [1], [0, 0, 1, 1], [], []>} : vector<8x8xf32>, vector<8x610xf32>, vector<8x610xf32> -> vector<8x610xf32>
    %169 = arith.addf %164, %168 : vector<8x610xf32>
    %c8 = arith.constant 8 : index
    %c0_234 = arith.constant 0 : index
    %c0_235 = arith.constant 0 : index
    %170 = vector.load %arg3[%c8, %c0_234, %c0_235] : memref<9x8x8xf32, #tpu.memory_space<vmem>>, vector<1x8x8xf32>
    %171 = vector.shape_cast %170 : vector<1x8x8xf32> to vector<8x8xf32>
    %c0_236 = arith.constant 0 : index
    %c38 = arith.constant 38 : index
    %172 = vector.load %arg10[%c0_236, %c38] : memref<8x648xf32, #tpu.memory_space<vmem>>, vector<8x610xf32>
    %cst_237 = arith.constant dense<0.000000e+00> : vector<8x610xf32>
    %173 = tpu.matmul %171, %172, %cst_237 {dimension_numbers = #tpu.dot_dimension_numbers<[1], [0], [0], [1], [0, 0, 1, 1], [], []>} : vector<8x8xf32>, vector<8x610xf32>, vector<8x610xf32> -> vector<8x610xf32>
    %174 = arith.addf %169, %173 : vector<8x610xf32>
    %175 = vector.broadcast %0 : vector<1x610xf32> to vector<8x610xf32>
    %176 = arith.mulf %174, %175 : vector<8x610xf32>
    %cst_238 = arith.constant dense<0.000000e+00> : vector<8xf32>
    %177 = vector.multi_reduction <add>, %176, %cst_238 [1] : vector<8x610xf32> to vector<8xf32>
    %178 = vector.shape_cast %177 : vector<8xf32> to vector<8x1xf32>
    %179 = arith.mulf %174, %176 : vector<8x610xf32>
    %cst_239 = arith.constant dense<0.000000e+00> : vector<8xf32>
    %180 = vector.multi_reduction <add>, %179, %cst_239 [1] : vector<8x610xf32> to vector<8xf32>
    %181 = vector.shape_cast %180 : vector<8xf32> to vector<8x1xf32>
    %cst_240 = arith.constant 0.001953125 : f32
    %182 = vector.broadcast %cst_240 : f32 to vector<8x1xf32>
    %183 = arith.mulf %178, %182 : vector<8x1xf32>
    %cst_241 = arith.constant 0.001953125 : f32
    %184 = vector.broadcast %cst_241 : f32 to vector<8x1xf32>
    %185 = arith.mulf %181, %184 : vector<8x1xf32>
    %186 = arith.mulf %183, %183 : vector<8x1xf32>
    %187 = arith.subf %185, %186 : vector<8x1xf32>
    %c0_242 = arith.constant 0 : index
    %c0_243 = arith.constant 0 : index
    %188 = vector.load %arg4[%c0_242, %c0_243] : memref<8x1xf32, #tpu.memory_space<vmem>>, vector<8x1xf32>
    %cst_244 = arith.constant 9.99999974E-6 : f32
    %189 = vector.broadcast %cst_244 : f32 to vector<8x1xf32>
    %190 = arith.addf %187, %189 : vector<8x1xf32>
    %191 = math.rsqrt %190 : vector<8x1xf32>
    %192 = arith.mulf %188, %191 : vector<8x1xf32>
    %c0_245 = arith.constant 0 : index
    %c0_246 = arith.constant 0 : index
    %193 = vector.load %arg5[%c0_245, %c0_246] : memref<8x1xf32, #tpu.memory_space<vmem>>, vector<8x1xf32>
    %194 = arith.mulf %183, %192 : vector<8x1xf32>
    %195 = arith.subf %193, %194 : vector<8x1xf32>
    %196 = vector.broadcast %192 : vector<8x1xf32> to vector<8x610xf32>
    %197 = arith.mulf %174, %196 : vector<8x610xf32>
    %198 = vector.broadcast %195 : vector<8x1xf32> to vector<8x610xf32>
    %199 = arith.addf %197, %198 : vector<8x610xf32>
    %cst_247 = arith.constant 0.000000e+00 : f32
    %200 = vector.broadcast %cst_247 : f32 to vector<8x610xf32>
    %201 = arith.maximumf %199, %200 : vector<8x610xf32>
    %202 = vector.broadcast %0 : vector<1x610xf32> to vector<8x610xf32>
    %203 = arith.mulf %201, %202 : vector<8x610xf32>
    %cst_248 = arith.constant 0.000000e+00 : f32
    %204 = vector.broadcast %cst_248 : f32 to vector<8x19xf32>
    %c0_249 = arith.constant 0 : index
    %c0_250 = arith.constant 0 : index
    %205 = vector.load %arg11[%c0_249, %c0_250] : memref<8x648xf32, #tpu.memory_space<vmem>>, vector<8x19xf32>
    tpu.vector_store %arg11[%c0_249, %c0_250], %204 {strides = array<i32>} : memref<8x648xf32, #tpu.memory_space<vmem>>, vector<8x19xf32>,
    %c0_251 = arith.constant 0 : index
    %c19_252 = arith.constant 19 : index
    %206 = vector.load %arg11[%c0_251, %c19_252] : memref<8x648xf32, #tpu.memory_space<vmem>>, vector<8x610xf32>
    tpu.vector_store %arg11[%c0_251, %c19_252], %203 {strides = array<i32>} : memref<8x648xf32, #tpu.memory_space<vmem>>, vector<8x610xf32>,
    %cst_253 = arith.constant 0.000000e+00 : f32
    %207 = vector.broadcast %cst_253 : f32 to vector<8x19xf32>
    %c0_254 = arith.constant 0 : index
    %c629 = arith.constant 629 : index
    %208 = vector.load %arg11[%c0_254, %c629] : memref<8x648xf32, #tpu.memory_space<vmem>>, vector<8x19xf32>
    tpu.vector_store %arg11[%c0_254, %c629], %207 {strides = array<i32>} : memref<8x648xf32, #tpu.memory_space<vmem>>, vector<8x19xf32>,
    %c0_255 = arith.constant 0 : index
    %c0_256 = arith.constant 0 : index
    %c0_257 = arith.constant 0 : index
    %209 = vector.load %arg6[%c0_255, %c0_256, %c0_257] : memref<9x8x8xf32, #tpu.memory_space<vmem>>, vector<1x8x8xf32>
    %210 = vector.shape_cast %209 : vector<1x8x8xf32> to vector<8x8xf32>
    %c0_258 = arith.constant 0 : index
    %c0_259 = arith.constant 0 : index
    %211 = vector.load %arg11[%c0_258, %c0_259] : memref<8x648xf32, #tpu.memory_space<vmem>>, vector<8x610xf32>
    %cst_260 = arith.constant dense<0.000000e+00> : vector<8x610xf32>
    %212 = tpu.matmul %210, %211, %cst_260 {dimension_numbers = #tpu.dot_dimension_numbers<[1], [0], [0], [1], [0, 0, 1, 1], [], []>} : vector<8x8xf32>, vector<8x610xf32>, vector<8x610xf32> -> vector<8x610xf32>
    %c1_261 = arith.constant 1 : index
    %c0_262 = arith.constant 0 : index
    %c0_263 = arith.constant 0 : index
    %213 = vector.load %arg6[%c1_261, %c0_262, %c0_263] : memref<9x8x8xf32, #tpu.memory_space<vmem>>, vector<1x8x8xf32>
    %214 = vector.shape_cast %213 : vector<1x8x8xf32> to vector<8x8xf32>
    %c0_264 = arith.constant 0 : index
    %c1_265 = arith.constant 1 : index
    %215 = vector.load %arg11[%c0_264, %c1_265] : memref<8x648xf32, #tpu.memory_space<vmem>>, vector<8x610xf32>
    %cst_266 = arith.constant dense<0.000000e+00> : vector<8x610xf32>
    %216 = tpu.matmul %214, %215, %cst_266 {dimension_numbers = #tpu.dot_dimension_numbers<[1], [0], [0], [1], [0, 0, 1, 1], [], []>} : vector<8x8xf32>, vector<8x610xf32>, vector<8x610xf32> -> vector<8x610xf32>
    %217 = arith.addf %212, %216 : vector<8x610xf32>
    %c2_267 = arith.constant 2 : index
    %c0_268 = arith.constant 0 : index
    %c0_269 = arith.constant 0 : index
    %218 = vector.load %arg6[%c2_267, %c0_268, %c0_269] : memref<9x8x8xf32, #tpu.memory_space<vmem>>, vector<1x8x8xf32>
    %219 = vector.shape_cast %218 : vector<1x8x8xf32> to vector<8x8xf32>
    %c0_270 = arith.constant 0 : index
    %c2_271 = arith.constant 2 : index
    %220 = vector.load %arg11[%c0_270, %c2_271] : memref<8x648xf32, #tpu.memory_space<vmem>>, vector<8x610xf32>
    %cst_272 = arith.constant dense<0.000000e+00> : vector<8x610xf32>
    %221 = tpu.matmul %219, %220, %cst_272 {dimension_numbers = #tpu.dot_dimension_numbers<[1], [0], [0], [1], [0, 0, 1, 1], [], []>} : vector<8x8xf32>, vector<8x610xf32>, vector<8x610xf32> -> vector<8x610xf32>
    %222 = arith.addf %217, %221 : vector<8x610xf32>
    %c3_273 = arith.constant 3 : index
    %c0_274 = arith.constant 0 : index
    %c0_275 = arith.constant 0 : index
    %223 = vector.load %arg6[%c3_273, %c0_274, %c0_275] : memref<9x8x8xf32, #tpu.memory_space<vmem>>, vector<1x8x8xf32>
    %224 = vector.shape_cast %223 : vector<1x8x8xf32> to vector<8x8xf32>
    %c0_276 = arith.constant 0 : index
    %c18_277 = arith.constant 18 : index
    %225 = vector.load %arg11[%c0_276, %c18_277] : memref<8x648xf32, #tpu.memory_space<vmem>>, vector<8x610xf32>
    %cst_278 = arith.constant dense<0.000000e+00> : vector<8x610xf32>
    %226 = tpu.matmul %224, %225, %cst_278 {dimension_numbers = #tpu.dot_dimension_numbers<[1], [0], [0], [1], [0, 0, 1, 1], [], []>} : vector<8x8xf32>, vector<8x610xf32>, vector<8x610xf32> -> vector<8x610xf32>
    %227 = arith.addf %222, %226 : vector<8x610xf32>
    %c4_279 = arith.constant 4 : index
    %c0_280 = arith.constant 0 : index
    %c0_281 = arith.constant 0 : index
    %228 = vector.load %arg6[%c4_279, %c0_280, %c0_281] : memref<9x8x8xf32, #tpu.memory_space<vmem>>, vector<1x8x8xf32>
    %229 = vector.shape_cast %228 : vector<1x8x8xf32> to vector<8x8xf32>
    %c0_282 = arith.constant 0 : index
    %c19_283 = arith.constant 19 : index
    %230 = vector.load %arg11[%c0_282, %c19_283] : memref<8x648xf32, #tpu.memory_space<vmem>>, vector<8x610xf32>
    %cst_284 = arith.constant dense<0.000000e+00> : vector<8x610xf32>
    %231 = tpu.matmul %229, %230, %cst_284 {dimension_numbers = #tpu.dot_dimension_numbers<[1], [0], [0], [1], [0, 0, 1, 1], [], []>} : vector<8x8xf32>, vector<8x610xf32>, vector<8x610xf32> -> vector<8x610xf32>
    %232 = arith.addf %227, %231 : vector<8x610xf32>
    %c5_285 = arith.constant 5 : index
    %c0_286 = arith.constant 0 : index
    %c0_287 = arith.constant 0 : index
    %233 = vector.load %arg6[%c5_285, %c0_286, %c0_287] : memref<9x8x8xf32, #tpu.memory_space<vmem>>, vector<1x8x8xf32>
    %234 = vector.shape_cast %233 : vector<1x8x8xf32> to vector<8x8xf32>
    %c0_288 = arith.constant 0 : index
    %c20_289 = arith.constant 20 : index
    %235 = vector.load %arg11[%c0_288, %c20_289] : memref<8x648xf32, #tpu.memory_space<vmem>>, vector<8x610xf32>
    %cst_290 = arith.constant dense<0.000000e+00> : vector<8x610xf32>
    %236 = tpu.matmul %234, %235, %cst_290 {dimension_numbers = #tpu.dot_dimension_numbers<[1], [0], [0], [1], [0, 0, 1, 1], [], []>} : vector<8x8xf32>, vector<8x610xf32>, vector<8x610xf32> -> vector<8x610xf32>
    %237 = arith.addf %232, %236 : vector<8x610xf32>
    %c6_291 = arith.constant 6 : index
    %c0_292 = arith.constant 0 : index
    %c0_293 = arith.constant 0 : index
    %238 = vector.load %arg6[%c6_291, %c0_292, %c0_293] : memref<9x8x8xf32, #tpu.memory_space<vmem>>, vector<1x8x8xf32>
    %239 = vector.shape_cast %238 : vector<1x8x8xf32> to vector<8x8xf32>
    %c0_294 = arith.constant 0 : index
    %c36_295 = arith.constant 36 : index
    %240 = vector.load %arg11[%c0_294, %c36_295] : memref<8x648xf32, #tpu.memory_space<vmem>>, vector<8x610xf32>
    %cst_296 = arith.constant dense<0.000000e+00> : vector<8x610xf32>
    %241 = tpu.matmul %239, %240, %cst_296 {dimension_numbers = #tpu.dot_dimension_numbers<[1], [0], [0], [1], [0, 0, 1, 1], [], []>} : vector<8x8xf32>, vector<8x610xf32>, vector<8x610xf32> -> vector<8x610xf32>
    %242 = arith.addf %237, %241 : vector<8x610xf32>
    %c7_297 = arith.constant 7 : index
    %c0_298 = arith.constant 0 : index
    %c0_299 = arith.constant 0 : index
    %243 = vector.load %arg6[%c7_297, %c0_298, %c0_299] : memref<9x8x8xf32, #tpu.memory_space<vmem>>, vector<1x8x8xf32>
    %244 = vector.shape_cast %243 : vector<1x8x8xf32> to vector<8x8xf32>
    %c0_300 = arith.constant 0 : index
    %c37_301 = arith.constant 37 : index
    %245 = vector.load %arg11[%c0_300, %c37_301] : memref<8x648xf32, #tpu.memory_space<vmem>>, vector<8x610xf32>
    %cst_302 = arith.constant dense<0.000000e+00> : vector<8x610xf32>
    %246 = tpu.matmul %244, %245, %cst_302 {dimension_numbers = #tpu.dot_dimension_numbers<[1], [0], [0], [1], [0, 0, 1, 1], [], []>} : vector<8x8xf32>, vector<8x610xf32>, vector<8x610xf32> -> vector<8x610xf32>
    %247 = arith.addf %242, %246 : vector<8x610xf32>
    %c8_303 = arith.constant 8 : index
    %c0_304 = arith.constant 0 : index
    %c0_305 = arith.constant 0 : index
    %248 = vector.load %arg6[%c8_303, %c0_304, %c0_305] : memref<9x8x8xf32, #tpu.memory_space<vmem>>, vector<1x8x8xf32>
    %249 = vector.shape_cast %248 : vector<1x8x8xf32> to vector<8x8xf32>
    %c0_306 = arith.constant 0 : index
    %c38_307 = arith.constant 38 : index
    %250 = vector.load %arg11[%c0_306, %c38_307] : memref<8x648xf32, #tpu.memory_space<vmem>>, vector<8x610xf32>
    %cst_308 = arith.constant dense<0.000000e+00> : vector<8x610xf32>
    %251 = tpu.matmul %249, %250, %cst_308 {dimension_numbers = #tpu.dot_dimension_numbers<[1], [0], [0], [1], [0, 0, 1, 1], [], []>} : vector<8x8xf32>, vector<8x610xf32>, vector<8x610xf32> -> vector<8x610xf32>
    %252 = arith.addf %247, %251 : vector<8x610xf32>
    %253 = vector.broadcast %0 : vector<1x610xf32> to vector<8x610xf32>
    %254 = arith.mulf %252, %253 : vector<8x610xf32>
    %cst_309 = arith.constant dense<0.000000e+00> : vector<8xf32>
    %255 = vector.multi_reduction <add>, %254, %cst_309 [1] : vector<8x610xf32> to vector<8xf32>
    %256 = vector.shape_cast %255 : vector<8xf32> to vector<8x1xf32>
    %257 = arith.mulf %252, %254 : vector<8x610xf32>
    %cst_310 = arith.constant dense<0.000000e+00> : vector<8xf32>
    %258 = vector.multi_reduction <add>, %257, %cst_310 [1] : vector<8x610xf32> to vector<8xf32>
    %259 = vector.shape_cast %258 : vector<8xf32> to vector<8x1xf32>
    %cst_311 = arith.constant 0.001953125 : f32
    %260 = vector.broadcast %cst_311 : f32 to vector<8x1xf32>
    %261 = arith.mulf %256, %260 : vector<8x1xf32>
    %cst_312 = arith.constant 0.001953125 : f32
    %262 = vector.broadcast %cst_312 : f32 to vector<8x1xf32>
    %263 = arith.mulf %259, %262 : vector<8x1xf32>
    %264 = arith.mulf %261, %261 : vector<8x1xf32>
    %265 = arith.subf %263, %264 : vector<8x1xf32>
    %c0_313 = arith.constant 0 : index
    %c0_314 = arith.constant 0 : index
    %266 = vector.load %arg7[%c0_313, %c0_314] : memref<8x1xf32, #tpu.memory_space<vmem>>, vector<8x1xf32>
    %cst_315 = arith.constant 9.99999974E-6 : f32
    %267 = vector.broadcast %cst_315 : f32 to vector<8x1xf32>
    %268 = arith.addf %265, %267 : vector<8x1xf32>
    %269 = math.rsqrt %268 : vector<8x1xf32>
    %270 = arith.mulf %266, %269 : vector<8x1xf32>
    %c0_316 = arith.constant 0 : index
    %c0_317 = arith.constant 0 : index
    %271 = vector.load %arg8[%c0_316, %c0_317] : memref<8x1xf32, #tpu.memory_space<vmem>>, vector<8x1xf32>
    %272 = arith.mulf %261, %270 : vector<8x1xf32>
    %273 = arith.subf %271, %272 : vector<8x1xf32>
    %274 = vector.broadcast %270 : vector<8x1xf32> to vector<8x610xf32>
    %275 = arith.mulf %252, %274 : vector<8x610xf32>
    %276 = vector.broadcast %273 : vector<8x1xf32> to vector<8x610xf32>
    %277 = arith.addf %275, %276 : vector<8x610xf32>
    %cst_318 = arith.constant 0.000000e+00 : f32
    %278 = vector.broadcast %cst_318 : f32 to vector<8x610xf32>
    %279 = arith.maximumf %277, %278 : vector<8x610xf32>
    %280 = vector.broadcast %0 : vector<1x610xf32> to vector<8x610xf32>
    %281 = arith.mulf %279, %280 : vector<8x610xf32>
    %c0_319 = arith.constant 0 : index
    %c0_320 = arith.constant 0 : index
    %282 = vector.load %arg9[%c0_319, %c0_320] : memref<8x648xf32, #tpu.memory_space<vmem>>, vector<8x610xf32>
    tpu.vector_store %arg9[%c0_319, %c0_320], %281 {strides = array<i32>} : memref<8x648xf32, #tpu.memory_space<vmem>>, vector<8x610xf32>,
    %cst_321 = arith.constant 0.000000e+00 : f32
    %283 = vector.broadcast %cst_321 : f32 to vector<8x38xf32>
    %c0_322 = arith.constant 0 : index
    %c610 = arith.constant 610 : index
    %284 = vector.load %arg9[%c0_322, %c610] : memref<8x648xf32, #tpu.memory_space<vmem>>, vector<8x38xf32>
    tpu.vector_store %arg9[%c0_322, %c610], %283 {strides = array<i32>} : memref<8x648xf32, #tpu.memory_space<vmem>>, vector<8x38xf32>,
    return
  }
}

</mosaic_0001>

<bundles_post_ra>
// kernel: tpu_custom_call.1
= control target key start
LH: loop header
LB: loop body
LE: loop exit
PB: predicated region body
PF: predicated region fallthrough
CT: control target
= control target key end

     0   :  { %s5496_s13 = smov 33   ;;  %s5497_s14 = smov 31   ;;  %v5505_v20 = vmov 0.0   ;;  %s6360_s0 = inlined_call_operand.vmem [shape: f32[4,512], index: 0, kind: input, shape index: {}]   ;;  %s6361_s1 = inlined_call_operand.vmem [shape: f32[4,512], index: 1, kind: input, shape index: {}]   ;;  %s6362_s2 = inlined_call_operand.vmem [shape: f32[1,610], index: 2, kind: input, shape index: {}]   ;;  %s6363_s3 = inlined_call_operand.vmem [shape: f32[9,8,8], index: 3, kind: input, shape index: {}]   ;;  %s6364_s4 = inlined_call_operand.vmem [shape: f32[8,1], index: 4, kind: input, shape index: {}]   ;;  %s6365_s5 = inlined_call_operand.vmem [shape: f32[8,1], index: 5, kind: input, shape index: {}]   ;;  %s6366_s6 = inlined_call_operand.vmem [shape: f32[9,8,8], index: 6, kind: input, shape index: {}]   ;;  %s6367_s7 = inlined_call_operand.vmem [shape: f32[8,1], index: 7, kind: input, shape index: {}]   ;;  %s6368_s8 = inlined_call_operand.vmem [shape: f32[8,1], index: 8, kind: input, shape index: {}]   ;;  %s6369_s9 = inlined_call_operand.hbm [shape: f32[8,648], index: 9, kind: output, shape index: {}]  }
   0x1   :  { %v150_v0 = vld [vmem:[%s6360_s0] sm:$0xf]  ;;  %s5498_s23 = smov 19   ;;  %v5439_v6 = vld [vmem:[%s6361_s1 + $0x4] ss:$0 sps:$4 sm:$0xff]   ;;  %s5499_s28 = smov 35   ;;  %637 = vmatprep.mubr.f32.mxu0 %v5505_v20  ;;  %2942 = vmatprep.mubr.f32.mxu1 %v5505_v20 }
   0x2   :  { %v131_v1 = vld [vmem:[%s6360_s0] sm:$0xf]  ;;  %152 = vrot.lane.b32.xlu1 %v150_v0, %s5496_s13  ;;  %v165_v7 = vld [vmem:[%s6360_s0 + $0x4] sm:$0xf]  ;;  %s5500_s12 = smov 45   ;;  %s5501_s17 = smov 21  }
   0x3   :  { %133 = vrot.lane.b32.xlu0 %v131_v1, %s5497_s14  ;;  %v5436_v2 = vld [vmem:[%s6361_s1] ss:$0 sps:$4 sm:$0xff]   ;;  %v5440_v8 = vld [vmem:[%s6361_s1 + $0x4] ss:$0 sps:$4 sm:$0xff]   ;;  %s5502_s22 = smov 37   ;;  %35 = vst [vmem:[#allocation2 + $0x8] sm:$0xff] %v5505_v20 }
   0x4   :  { %v5437_v3 = vld [vmem:[%s6361_s1] ss:$0 sps:$4 sm:$0xff]   ;;  %v240_v9 = vld [vmem:[%s6360_s0 + $0x4] sm:$0xf]  ;;  %34 = vst [vmem:[#allocation2] sm:$0xff] %v5505_v20  ;;  %36 = vst [vmem:[#allocation2 + $0x10] sm:$0xff] %v5505_v20 }
   0x5   :  { %v5438_v4 = vld [vmem:[%s6361_s1] ss:$0 sps:$4 sm:$0xff]   ;;  %v5442_v12 = vld [vmem:[%s6361_s1 + $0x4] ss:$0 sps:$4 sm:$0xff]   ;;  %37 = vst [vmem:[#allocation2 + $0x18] sm:$0xff] %v5505_v20  ;;  %38 = vst [vmem:[#allocation2 + $0x20] sm:$0xff] %v5505_v20 }
   0x6   :  { %160 = vrot.lane.b32.xlu1 %v5436_v2, %s5496_s13  ;;  %v41_v5 = vld [vmem:[%s6360_s0] sm:$0xf]  ;;  %v180_v13 = vld [vmem:[%s6360_s0 + $0x4] sm:$0xf] }
   0x7   :  { %143 = vrot.lane.b32.xlu0 %v5437_v3, %s5497_s14  ;;  %v5441_v10 = vld [vmem:[%s6361_s1] ss:$0 sps:$4 sm:$0xff]   ;;  %v5443_v14 = vld [vmem:[%s6361_s1 + $0x4] ss:$0 sps:$4 sm:$0xff]  }
   0x8   :  { %v56_v11 = vld [vmem:[%s6360_s0] sm:$0xf]  ;;  %v259_v15 = vld [vmem:[%s6360_s0 + $0x4] sm:$0xf] }
   0x9   :  { %v5444_v16 = vld [vmem:[%s6361_s1] ss:$0 sps:$4 sm:$0xff]   ;;  %v5445_v18 = vld [vmem:[%s6361_s1 + $0x4] ss:$0 sps:$4 sm:$0xff]  }
   0xa   :  { %51 = vrot.lane.b32.xlu1 %v5438_v4, %s5498_s23  ;;  %v71_v17 = vld [vmem:[%s6360_s0] sm:$0xf]  ;;  %v195_v19 = vld [vmem:[%s6360_s0 + $0x4] sm:$0xf] }
   0xb   :  { %43 = vrot.lane.b32.xlu0 %v41_v5, %s5498_s23  ;;  %v5446_v21 = vld [vmem:[%s6361_s1 + $0x4] ss:$0 sps:$4 sm:$0xff]  }
   0xc   :  { %v274_v22 = vld [vmem:[%s6360_s0 + $0x4] sm:$0xf] }
   0xe   :  { %175 = vrot.lane.b32.xlu1 %v5439_v6, %s5499_s28 }
   0xf   :  { %167 = vrot.lane.b32.xlu0 %v165_v7, %s5499_s28  ;;  %s5503_s28 = smov 47  }
  0x12   :  { %252 = vrot.lane.b32.xlu1 %v5440_v8, %s5500_s12 }
  0x13   :  { %242 = vrot.lane.b32.xlu0 %v240_v9, %s5500_s12  ;;  %s5504_s12 = smov 23  }
  0x16   :  { %66 = vrot.lane.b32.xlu1 %v5441_v10, %s5501_s17 }
  0x17   :  { %58 = vrot.lane.b32.xlu0 %v56_v11, %s5501_s17  ;;  %s5506_s17 = smov 39  }
  0x1a   :  { %190 = vrot.lane.b32.xlu1 %v5442_v12, %s5502_s22 }
  0x1b   :  { %182 = vrot.lane.b32.xlu0 %v180_v13, %s5502_s22 }
  0x1e   :  { %269 = vrot.lane.b32.xlu1 %v5443_v14, %s5503_s28 }
  0x1f   :  { %261 = vrot.lane.b32.xlu0 %v259_v15, %s5503_s28 }
  0x22   :  { %81 = vrot.lane.b32.xlu1 %v5444_v16, %s5504_s12 }
  0x23   :  { %73 = vrot.lane.b32.xlu0 %v71_v17, %s5504_s12 }
  0x26   :  { %205 = vrot.lane.b32.xlu1 %v5445_v18, %s5506_s17 }
  0x27   :  { %197 = vrot.lane.b32.xlu0 %v195_v19, %s5506_s17 }
  0x28   :  { %14 = vsyncpa [#allocation5], 0  ;;  %s5507_s22 = smov 49   ;;  %v5447_v23 = vld [vmem:[%s6361_s1 + $0x8] ss:$0 sps:$4 sm:$0xff]   ;;  %s5508_s28 = smov 91  }
  0x29   :  { %v319_v24 = vld [vmem:[%s6360_s0 + $0x8] sm:$0xf]  ;;  %v5448_v25 = vld [vmem:[%s6361_s1] ss:$0 sps:$4 sm:$0xff]   ;;  %s5509_s12 = smov 25   ;;  %s5510_s17 = smov 41  }
  0x2a   :  { %284 = vrot.lane.b32.xlu1 %v5446_v21, %s5507_s22  ;;  %v86_v26 = vld [vmem:[%s6360_s0] sm:$0xf]  ;;  %v5449_v27 = vld [vmem:[%s6361_s1 + $0x4] ss:$0 sps:$4 sm:$0xff]   ;;  %v5450_v29 = vld [vmem:[%s6361_s1 + $0x8] ss:$0 sps:$4 sm:$0xff]  }
  0x2b   :  { %276 = vrot.lane.b32.xlu0 %v274_v22, %s5507_s22  ;;  %v210_v28 = vld [vmem:[%s6360_s0 + $0x4] sm:$0xf]  ;;  %v289_v30 = vld [vmem:[%s6360_s0 + $0x8] sm:$0xf]  ;;  %s5511_s22 = smov 87   ;;  %s5512_s29 = smov 93  }
  0x2c   :  { %v5451_v31 = vld [vmem:[%s6361_s1 + $0x8] ss:$0 sps:$4 sm:$0xff]   ;;  %v5452_v33 = vld [vmem:[%s6361_s1 + $0xc] ss:$0 sps:$4 sm:$0xff]   ;;  %s5513_s13 = smov 105   ;;  %s5514_s18 = smov 27  }
  0x2d   :  { %v338_v32 = vld [vmem:[%s6360_s0 + $0x8] sm:$0xf]  ;;  %v428_v34 = vld [vmem:[%s6360_s0 + $0xc] sm:$0xf]  ;;  %v5453_v35 = vld [vmem:[%s6361_s1] ss:$0 sps:$4 sm:$0xff]  }
  0x2e   :  { %331 = vrot.lane.b32.xlu1 %v5447_v23, %s5508_s28  ;;  %v101_v36 = vld [vmem:[%s6360_s0] sm:$0xf]  ;;  %v5454_v37 = vld [vmem:[%s6361_s1 + $0x4] ss:$0 sps:$4 sm:$0xff]   ;;  %s5515_s24 = smov 43   ;;  %s5516_s30 = smov 89  }
  0x2f   :  { %321 = vrot.lane.b32.xlu0 %v319_v24, %s5508_s28  ;;  %v225_v38 = vld [vmem:[%s6360_s0 + $0x4] sm:$0xf]  ;;  %v5455_v39 = vld [vmem:[%s6361_s1 + $0x8] ss:$0 sps:$4 sm:$0xff]   ;;  %s5517_s14 = smov 95   ;;  %s5518_s19 = smov 107  }
  0x30   :  { %v304_v40 = vld [vmem:[%s6360_s0 + $0x8] sm:$0xf]  ;;  %v5457_v43 = vld [vmem:[%s6361_s1 + $0xc] ss:$0 sps:$4 sm:$0xff]   ;;  %v5458_v45 = vld [vmem:[%s6361_s1] ss:$0 sps:$4 sm:$0xff]  }
  0x31   :  { %v5456_v41 = vld [vmem:[%s6361_s1 + $0x8] ss:$0 sps:$4 sm:$0xff]   ;;  %v447_v44 = vld [vmem:[%s6360_s0 + $0xc] sm:$0xf]  ;;  %v116_v46 = vld [vmem:[%s6360_s0] sm:$0xf] }
  0x32   :  { %96 = vrot.lane.b32.xlu1 %v5448_v25, %s5509_s12  ;;  %v353_v42 = vld [vmem:[%s6360_s0 + $0x8] sm:$0xf]  ;;  %s5519_s25 = smov 29   ;;  %s5520_s10 = smov 97   ;;  %v5460_v49 = vld [vmem:[%s6361_s1 + $0xc] ss:$0 sps:$4 sm:$0xff]  }
  0x33   :  { %88 = vrot.lane.b32.xlu0 %v86_v26, %s5509_s12  ;;  %v5459_v47 = vld [vmem:[%s6361_s1 + $0x8] ss:$0 sps:$4 sm:$0xff]   ;;  %v462_v50 = vld [vmem:[%s6360_s0 + $0xc] sm:$0xf]  ;;  %s5521_s15 = smov 109   ;;  %s5522_s20 = smov 99  }
  0x34   :  { %v368_v48 = vld [vmem:[%s6360_s0 + $0x8] sm:$0xf]  ;;  %v5462_v53 = vld [vmem:[%s6361_s1 + $0xc] ss:$0 sps:$4 sm:$0xff]   ;;  %s5523_s26 = smov 111   ;;  %s5524_s11 = smov 101  }
  0x35   :  { %v5461_v51 = vld [vmem:[%s6361_s1 + $0x8] ss:$0 sps:$4 sm:$0xff]   ;;  %v477_v54 = vld [vmem:[%s6360_s0 + $0xc] sm:$0xf]  ;;  %vm138_vm0 = vcmask 117760   ;;  %vm155_vm1 = vcmask 265352  }
  0x36   :  { %220 = vrot.lane.b32.xlu1 %v5449_v27, %s5510_s17  ;;  %v383_v52 = vld [vmem:[%s6360_s0 + $0x8] sm:$0xf]  ;;  %v5464_v57 = vld [vmem:[%s6361_s1 + $0xc] ss:$0 sps:$4 sm:$0xff]   ;;  %vm148_vm2 = vcmask 121860   ;;  %vm163_vm3 = vcmask 269452  }
  0x37   :  { %212 = vrot.lane.b32.xlu0 %v210_v28, %s5510_s17  ;;  %v5463_v55 = vld [vmem:[%s6361_s1 + $0x8] ss:$0 sps:$4 sm:$0xff]   ;;  %v492_v58 = vld [vmem:[%s6360_s0 + $0xc] sm:$0xf]  ;;  %s5525_s17 = smov 113   ;;  %vm54_vm4 = vcmask 285852  }
  0x38   :  { %v398_v56 = vld [vmem:[%s6360_s0 + $0x8] sm:$0xf]  ;;  %v5465_v59 = vld [vmem:[%s6361_s1 + $0xc] ss:$0 sps:$4 sm:$0xff]   ;;  %vm46_vm5 = vcmask 281752   ;;  %vm178_vm6 = vcmask 417052  }
  0x39   :  { %v413_v60 = vld [vmem:[%s6360_s0 + $0xc] sm:$0xf]  ;;  %vm170_vm7 = vcmask 412952   ;;  %vm257_vm8 = vcmask 105476   ;;  %vm247_vm9 = vcmask 101376   ;;  %vm69_vm10 = vcmask 433452  }
  0x3a   :  { %299 = vrot.lane.b32.xlu1 %v5450_v29, %s5511_s22  ;;  %v5466_v63 = vld [vmem:[%s6361_s1 + $0xc] ss:$0 sps:$4 sm:$0xff]   ;;  %vm61_vm11 = vcmask 429352   ;;  %vm193_vm12 = vcmask 564652   ;;  %vm185_vm13 = vcmask 560552   ;;  %vm272_vm14 = vcmask 253052  }
  0x3b   :  { %291 = vrot.lane.b32.xlu0 %v289_v30, %s5511_s22  ;;  %s5526_s22 = smov 103   ;;  %v507_v0 = vld [vmem:[%s6360_s0 + $0xc] sm:$0xf]  ;;  %vm264_vm15 = vcmask 248952   ;;  %s5532_s16 = smov 108  }
  0x3c   :  { %v5467_v3 = vld [vmem:[%s6361_s1 + $0xc] ss:$0 sps:$4 sm:$0xff]   ;;  %s5530_s1 = smov 126  }
  0x3d   :  { %v522_v4 = vld [vmem:[%s6360_s0 + $0xc] sm:$0xf]  ;;  %s5529_s0 = smov 127  }
  0x3e   :  { %348 = vrot.lane.b32.xlu1 %v5451_v31, %s5512_s29 }
  0x3f   :  { %340 = vrot.lane.b32.xlu0 %v338_v32, %s5512_s29  ;;  %s5527_s29 = smov 115  }
  0x42   :  { %440 = vrot.lane.b32.xlu1 %v5452_v33, %s5513_s13 }
  0x43   :  { %430 = vrot.lane.b32.xlu0 %v428_v34, %s5513_s13  ;;  %s5528_s13 = smov 117  }
  0x46   :  { %111 = vrot.lane.b32.xlu1 %v5453_v35, %s5514_s18 }
  0x47   :  { %103 = vrot.lane.b32.xlu0 %v101_v36, %s5514_s18  ;;  %s5534_s18 = smov 90  }
  0x4a   :  { %235 = vrot.lane.b32.xlu1 %v5454_v37, %s5515_s24 }
  0x4b   :  { %227 = vrot.lane.b32.xlu0 %v225_v38, %s5515_s24 }
  0x4e   :  { %314 = vrot.lane.b32.xlu1 %v5455_v39, %s5516_s30 }
  0x4f   :  { %306 = vrot.lane.b32.xlu0 %v304_v40, %s5516_s30 }
  0x52   :  { %363 = vrot.lane.b32.xlu1 %v5456_v41, %s5517_s14 }
  0x53   :  { %355 = vrot.lane.b32.xlu0 %v353_v42, %s5517_s14  ;;  %s5531_s14 = smov 110  }
  0x56   :  { %457 = vrot.lane.b32.xlu1 %v5457_v43, %s5518_s19 }
  0x57   :  { %449 = vrot.lane.b32.xlu0 %v447_v44, %s5518_s19 }
  0x5a   :  { %126 = vrot.lane.b32.xlu1 %v5458_v45, %s5519_s25 }
  0x5b   :  { %118 = vrot.lane.b32.xlu0 %v116_v46, %s5519_s25 }
  0x5e   :  { %378 = vrot.lane.b32.xlu1 %v5459_v47, %s5520_s10 }
  0x5f   :  { %370 = vrot.lane.b32.xlu0 %v368_v48, %s5520_s10 }
  0x62   :  { %472 = vrot.lane.b32.xlu1 %v5460_v49, %s5521_s15 }
  0x63   :  { %464 = vrot.lane.b32.xlu0 %v462_v50, %s5521_s15 }
  0x66   :  { %393 = vrot.lane.b32.xlu1 %v5461_v51, %s5522_s20 }
  0x67   :  { %385 = vrot.lane.b32.xlu0 %v383_v52, %s5522_s20 }
  0x6a   :  { %487 = vrot.lane.b32.xlu1 %v5462_v53, %s5523_s26 }
  0x6b   :  { %479 = vrot.lane.b32.xlu0 %v477_v54, %s5523_s26 }
  0x6e   :  { %408 = vrot.lane.b32.xlu1 %v5463_v55, %s5524_s11 }
  0x6f   :  { %400 = vrot.lane.b32.xlu0 %v398_v56, %s5524_s11 }
  0x72   :  { %502 = vrot.lane.b32.xlu1 %v5464_v57, %s5525_s17 }
  0x73   :  { %494 = vrot.lane.b32.xlu0 %v492_v58, %s5525_s17  ;;  %s5533_s17 = smov 92  }
  0x74   :  { %v153_v61 = vpop.permute.xlu1 %152 }
  0x75   :  { %v5781_v62 = vpop.permute.xlu0 %133 }
  0x76   :  { %139 = vst.msk [vmem:[#allocation2 + $0x8] sm:$0xf] %vm138_vm0, %v5781_v62  ;;  %423 = vrot.lane.b32.xlu1 %v5465_v59, %s5526_s22  ;;  %vm84_vm0 = vcmask 581052  }
  0x77   :  { %415 = vrot.lane.b32.xlu0 %v413_v60, %s5526_s22  ;;  %156 = vst.msk [vmem:[#allocation2 + $0x8] sm:$0xf] %vm155_vm1, %v153_v61  ;;  %vm76_vm1 = vcmask 576952  }
  0x78   :  { %v161_v1 = vpop.permute.xlu1 %160 }
  0x79   :  { %v5790_v2 = vpop.permute.xlu0 %143 }
  0x7a   :  { %149 = vst.msk [vmem:[#allocation2 + $0x8] sm:$0xf0] %vm148_vm2, %v5790_v2  ;;  %517 = vrot.lane.b32.xlu1 %v5466_v63, %s5527_s29  ;;  %vm208_vm2 = vcmask 712252  }
  0x7b   :  { %509 = vrot.lane.b32.xlu0 %v507_v0, %s5527_s29  ;;  %164 = vst.msk [vmem:[#allocation2 + $0x8] sm:$0xf0] %vm163_vm3, %v161_v1  ;;  %vm200_vm3 = vcmask 708152  }
  0x7c   :  { %v52_v5 = vpop.permute.xlu1 %51 }
  0x7d   :  { %v44_v6 = vpop.permute.xlu0 %43  ;;  %55 = vst.msk [vmem:[#allocation2] sm:$0xf0] %vm54_vm4, %v52_v5  ;;  %vm287_vm4 = vcmask 400652  }
  0x7e   :  { %47 = vst.msk [vmem:[#allocation2] sm:$0xf] %vm46_vm5, %v44_v6  ;;  %532 = vrot.lane.b32.xlu1 %v5467_v3, %s5528_s13  ;;  %vm279_vm5 = vcmask 396552  }
  0x7f   :  { %524 = vrot.lane.b32.xlu0 %v522_v4, %s5528_s13 }
  0x80   :  { %v176_v7 = vpop.permute.xlu1 %175 }
  0x81   :  { %v168_v8 = vpop.permute.xlu0 %167  ;;  %179 = vst.msk [vmem:[#allocation2 + $0x8] sm:$0xf0] %vm178_vm6, %v176_v7  ;;  %vm336_vm6 = vcmask 89092  }
  0x82   :  { %171 = vst.msk [vmem:[#allocation2 + $0x8] sm:$0xf] %vm170_vm7, %v168_v8  ;;  %vm326_vm7 = vcmask 84992  }
  0x84   :  { %v5799_v9 = vpop.permute.xlu1 %252 }
  0x85   :  { %v5801_v10 = vpop.permute.xlu0 %242  ;;  %258 = vst.msk [vmem:[#allocation2 + $0x10] sm:$0xf0] %vm257_vm8, %v5799_v9  ;;  %vm99_vm8 = vcmask 728652  }
  0x86   :  { %248 = vst.msk [vmem:[#allocation2 + $0x10] sm:$0xf] %vm247_vm9, %v5801_v10  ;;  %vm91_vm9 = vcmask 724552  }
  0x88   :  { %v67_v11 = vpop.permute.xlu1 %66 }
  0x89   :  { %v59_v12 = vpop.permute.xlu0 %58  ;;  %70 = vst.msk [vmem:[#allocation2] sm:$0xf0] %vm69_vm10, %v67_v11  ;;  %vm39_vm10 = vcmask 64512  }
  0x8a   :  { %62 = vst.msk [vmem:[#allocation2] sm:$0xf] %vm61_vm11, %v59_v12  ;;  %vm223_vm11 = vcmask 859852  }
  0x8b   :  { %40 = vst.msk [vmem:[#allocation2 + $0x28] sm:$0xff] %vm39_vm10, %v5505_v20  ;;  %2842 = vst.msk [vmem:[#allocation3 + $0x28] sm:$0xff] %vm39_vm10, %v5505_v20 }
  0x8c   :  { %v191_v13 = vpop.permute.xlu1 %190  ;;  %5085 = vst.msk [vmem:[#allocation4 + $0x28] sm:$0xff] %vm39_vm10, %v5505_v20 }
  0x8d   :  { %v183_v14 = vpop.permute.xlu0 %182  ;;  %194 = vst.msk [vmem:[#allocation2 + $0x8] sm:$0xf0] %vm193_vm12, %v191_v13  ;;  %vm215_vm12 = vcmask 855752   ;;  %v5100_v13 = vld [vmem:[%s6363_s3 + $0x8] sm:$0xff] }
  0x8e   :  { %186 = vst.msk [vmem:[#allocation2 + $0x8] sm:$0xf] %vm185_vm13, %v183_v14  ;;  %vm302_vm13 = vcmask 843452  }
  0x90   :  { %v270_v15 = vpop.permute.xlu1 %269 }
  0x91   :  { %v262_v16 = vpop.permute.xlu0 %261  ;;  %273 = vst.msk [vmem:[#allocation2 + $0x10] sm:$0xf0] %vm272_vm14, %v270_v15  ;;  %vm294_vm14 = vcmask 839352  }
  0x92   :  { %265 = vst.msk [vmem:[#allocation2 + $0x10] sm:$0xf] %vm264_vm15, %v262_v16  ;;  %vm351_vm15 = vcmask 236652   ;;  %v1975_v7 = vld [vmem:[#allocation2 + $0x28] sm:$0xff] }
  0x94   :  { %v82_v17 = vpop.permute.xlu1 %81 }
  0x95   :  { %v74_v18 = vpop.permute.xlu0 %73  ;;  %85 = vst.msk [vmem:[#allocation2] sm:$0xf0] %vm84_vm0, %v82_v17  ;;  %vm343_vm0 = vcmask 232552  }
  0x96   :  { %77 = vst.msk [vmem:[#allocation2] sm:$0xf] %vm76_vm1, %v74_v18  ;;  %vm445_vm1 = vcmask 72708  }
  0x98   :  { %v206_v19 = vpop.permute.xlu1 %205 }
  0x99   :  { %v198_v21 = vpop.permute.xlu0 %197  ;;  %209 = vst.msk [vmem:[#allocation2 + $0x8] sm:$0xf0] %vm208_vm2, %v206_v19  ;;  %vm435_vm2 = vcmask 68608  }
  0x9a   :  { %201 = vst.msk [vmem:[#allocation2 + $0x8] sm:$0xf] %vm200_vm3, %v198_v21  ;;  %vm114_vm3 = vcmask 876252  }
  0x9c   :  { %v285_v22 = vpop.permute.xlu1 %284 }
  0x9d   :  { %v277_v23 = vpop.permute.xlu0 %276  ;;  %288 = vst.msk [vmem:[#allocation2 + $0x10] sm:$0xf0] %vm287_vm4, %v285_v22  ;;  %vm106_vm4 = vcmask 872152  }
  0x9e   :  { %280 = vst.msk [vmem:[#allocation2 + $0x10] sm:$0xf] %vm279_vm5, %v277_v23  ;;  %vm238_vm5 = vcmask 1007452  }
  0xa0   :  { %v332_v24 = vpop.permute.xlu1 %331 }
  0xa1   :  { %v322_v25 = vpop.permute.xlu0 %321  ;;  %337 = vst.msk [vmem:[#allocation2 + $0x18] sm:$0xf0] %vm336_vm6, %v332_v24  ;;  %vm230_vm6 = vcmask 1003352  }
  0xa2   :  { %327 = vst.msk [vmem:[#allocation2 + $0x18] sm:$0xf] %vm326_vm7, %v322_v25  ;;  %vm255_vm7 = vcmask 1048556  }
  0xa4   :  { %v97_v26 = vpop.permute.xlu1 %96 }
  0xa5   :  { %v89_v27 = vpop.permute.xlu0 %88  ;;  %100 = vst.msk [vmem:[#allocation2] sm:$0xf0] %vm99_vm8, %v97_v26  ;;  %vm245_vm8 = vcmask 1044456  }
  0xa6   :  { %92 = vst.msk [vmem:[#allocation2] sm:$0xf] %vm91_vm9, %v89_v27  ;;  %vm317_vm9 = vcmask 991052  }
  0xa8   :  { %v221_v28 = vpop.permute.xlu1 %220 }
  0xa9   :  { %v213_v29 = vpop.permute.xlu0 %212  ;;  %224 = vst.msk [vmem:[#allocation2 + $0x8] sm:$0xf0] %vm223_vm11, %v221_v28  ;;  %vm309_vm11 = vcmask 986952  }
  0xaa   :  { %216 = vst.msk [vmem:[#allocation2 + $0x8] sm:$0xf] %vm215_vm12, %v213_v29  ;;  %vm334_vm12 = vcmask 1048540  }
  0xac   :  { %v300_v30 = vpop.permute.xlu1 %299 }
  0xad   :  { %v292_v31 = vpop.permute.xlu0 %291  ;;  %303 = vst.msk [vmem:[#allocation2 + $0x10] sm:$0xf0] %vm302_vm13, %v300_v30  ;;  %vm324_vm13 = vcmask 1044440  }
  0xae   :  { %295 = vst.msk [vmem:[#allocation2 + $0x10] sm:$0xf] %vm294_vm14, %v292_v31  ;;  %vm366_vm14 = vcmask 384252  }
  0xb0   :  { %v349_v32 = vpop.permute.xlu1 %348 }
  0xb1   :  { %v341_v33 = vpop.permute.xlu0 %340  ;;  %352 = vst.msk [vmem:[#allocation2 + $0x18] sm:$0xf0] %vm351_vm15, %v349_v32  ;;  %vm358_vm15 = vcmask 380152  }
  0xb2   :  { %344 = vst.msk [vmem:[#allocation2 + $0x18] sm:$0xf] %vm343_vm0, %v341_v33  ;;  %vm460_vm0 = vcmask 220252  }
  0xb4   :  { %v5811_v34 = vpop.permute.xlu1 %440 }
  0xb5   :  { %v5813_v35 = vpop.permute.xlu0 %430  ;;  %446 = vst.msk [vmem:[#allocation2 + $0x20] sm:$0xf0] %vm445_vm1, %v5811_v34  ;;  %vm452_vm1 = vcmask 216152  }
  0xb6   :  { %436 = vst.msk [vmem:[#allocation2 + $0x20] sm:$0xf] %vm435_vm2, %v5813_v35  ;;  %vm129_vm2 = vcmask 1023852  }
  0xb8   :  { %v112_v36 = vpop.permute.xlu1 %111 }
  0xb9   :  { %v104_v37 = vpop.permute.xlu0 %103  ;;  %115 = vst.msk [vmem:[#allocation2] sm:$0xf0] %vm114_vm3, %v112_v36  ;;  %vm121_vm3 = vcmask 1019752  }
  0xba   :  { %107 = vst.msk [vmem:[#allocation2] sm:$0xf] %vm106_vm4, %v104_v37  ;;  %vm146_vm4 = vcmask 1048572  }
  0xbc   :  { %v236_v38 = vpop.permute.xlu1 %235 }
  0xbd   :  { %v228_v39 = vpop.permute.xlu0 %227  ;;  %239 = vst.msk [vmem:[#allocation2 + $0x8] sm:$0xf0] %vm238_vm5, %v236_v38  ;;  %vm136_vm5 = vcmask 1044472  }
  0xbe   :  { %231 = vst.msk [vmem:[#allocation2 + $0x8] sm:$0xf] %vm230_vm6, %v228_v39  ;;  %vm381_vm6 = vcmask 531852  }
  0xbf   :  { %256 = vst.msk [vmem:[#allocation2 + $0x8] sm:$0xf0] %vm255_vm7, %v5799_v9  ;;  %vm373_vm7 = vcmask 527752  }
  0xc0   :  { %246 = vst.msk [vmem:[#allocation2 + $0x8] sm:$0xf] %vm245_vm8, %v5801_v10  ;;  %v315_v40 = vpop.permute.xlu1 %314  ;;  %vm475_vm8 = vcmask 367852  }
  0xc1   :  { %v307_v41 = vpop.permute.xlu0 %306  ;;  %318 = vst.msk [vmem:[#allocation2 + $0x10] sm:$0xf0] %vm317_vm9, %v315_v40  ;;  %vm467_vm9 = vcmask 363752  }
  0xc2   :  { %310 = vst.msk [vmem:[#allocation2 + $0x10] sm:$0xf] %vm309_vm11, %v307_v41  ;;  %vm396_vm11 = vcmask 679452  }
  0xc3   :  { %335 = vst.msk [vmem:[#allocation2 + $0x10] sm:$0xf0] %vm334_vm12, %v332_v24  ;;  %vm388_vm12 = vcmask 675352  }
  0xc4   :  { %325 = vst.msk [vmem:[#allocation2 + $0x10] sm:$0xf] %vm324_vm13, %v322_v25  ;;  %v364_v42 = vpop.permute.xlu1 %363  ;;  %vm490_vm13 = vcmask 515452   ;;  %v537_v25 = vld [vmem:[%s6363_s3] sm:$0xff] }
  0xc5   :  { %v356_v43 = vpop.permute.xlu0 %355  ;;  %367 = vst.msk [vmem:[#allocation2 + $0x18] sm:$0xf0] %vm366_vm14, %v364_v42  ;;  %vm482_vm14 = vcmask 511352  }
  0xc6   :  { %359 = vst.msk [vmem:[#allocation2 + $0x18] sm:$0xf] %vm358_vm15, %v356_v43  ;;  %vm411_vm15 = vcmask 827052  }
  0xc7   :  { %v5829_v56 = vld [vmem:[#allocation2 + $0x8] sm:$0xff] }
  0xc8   :  { %v458_v44 = vpop.permute.xlu1 %457 }
  0xc9   :  { %v450_v45 = vpop.permute.xlu0 %449  ;;  %461 = vst.msk [vmem:[#allocation2 + $0x20] sm:$0xf0] %vm460_vm0, %v458_v44  ;;  %vm403_vm0 = vcmask 822952  }
  0xca   :  { %453 = vst.msk [vmem:[#allocation2 + $0x20] sm:$0xf] %vm452_vm1, %v450_v45  ;;  %vm505_vm1 = vcmask 663052   ;;  %v5111_v45 = vld [vmem:[%s6363_s3 + $0x18] sm:$0xff] }
  0xcb   :  { %v5819_v46 = vld [vmem:[#allocation2 + $0x10] sm:$0xff] }
  0xcc   :  { %554 = vrot.lane.b32.xlu1 %v5819_v46, %s5529_s0  ;;  %v127_v47 = vpop.permute.xlu1 %126 }
  0xcd   :  { %v119_v48 = vpop.permute.xlu0 %118  ;;  %130 = vst.msk [vmem:[#allocation2] sm:$0xf0] %vm129_vm2, %v127_v47  ;;  %vm497_vm2 = vcmask 658952  }
  0xce   :  { %122 = vst.msk [vmem:[#allocation2] sm:$0xf] %vm121_vm3, %v119_v48  ;;  %vm426_vm3 = vcmask 974652  }
  0xcf   :  { %147 = vst.msk [vmem:[#allocation2] sm:$0xf0] %vm146_vm4, %v5790_v2  ;;  %vm418_vm4 = vcmask 970552  }
  0xd0   :  { %137 = vst.msk [vmem:[#allocation2] sm:$0xf] %vm136_vm5, %v5781_v62  ;;  %v379_v49 = vpop.permute.xlu1 %378  ;;  %vm443_vm5 = vcmask 1048524  }
  0xd1   :  { %v371_v50 = vpop.permute.xlu0 %370  ;;  %382 = vst.msk [vmem:[#allocation2 + $0x18] sm:$0xf0] %vm381_vm6, %v379_v49  ;;  %vm433_vm6 = vcmask 1044424  }
  0xd2   :  { %374 = vst.msk [vmem:[#allocation2 + $0x18] sm:$0xf] %vm373_vm7, %v371_v50  ;;  %vm520_vm7 = vcmask 810652  }
  0xd4   :  { %v473_v51 = vpop.permute.xlu1 %472 }
  0xd5   :  { %v465_v52 = vpop.permute.xlu0 %464  ;;  %476 = vst.msk [vmem:[#allocation2 + $0x20] sm:$0xf0] %vm475_vm8, %v473_v51  ;;  %vm512_vm8 = vcmask 806552  }
  0xd6   :  { %468 = vst.msk [vmem:[#allocation2 + $0x20] sm:$0xf] %vm467_vm9, %v465_v52  ;;  %vm535_vm9 = vcmask 958252  }
  0xd7   :  { %v5825_v53 = vld [vmem:[#allocation2] sm:$0xff] }
  0xd8   :  { %550 = vrot.lane.b32.xlu0 %v5825_v53, %s5529_s0  ;;  %v394_v54 = vpop.permute.xlu1 %393 }
  0xd9   :  { %v386_v55 = vpop.permute.xlu0 %385  ;;  %397 = vst.msk [vmem:[#allocation2 + $0x18] sm:$0xf0] %vm396_vm11, %v394_v54  ;;  %vm527_vm11 = vcmask 954152   ;;  %v5115_v54 = vld [vmem:[%s6363_s3 + $0x20] sm:$0xff] }
  0xda   :  { %389 = vst.msk [vmem:[#allocation2 + $0x18] sm:$0xf] %vm388_vm12, %v386_v55  ;;  %vm560_vm12 = vcmask 1039360  }
  0xdc   :  { %552 = vrot.lane.b32.xlu0 %v5829_v56, %s5529_s0  ;;  %v488_v57 = vpop.permute.xlu1 %487 }
  0xdd   :  { %v480_v58 = vpop.permute.xlu0 %479  ;;  %491 = vst.msk [vmem:[#allocation2 + $0x20] sm:$0xf0] %vm490_vm13, %v488_v57  ;;  %vm5535_vm13 = vmmov 0  }
  0xde   :  { %483 = vst.msk [vmem:[#allocation2 + $0x20] sm:$0xf] %vm482_vm14, %v480_v58  ;;  %vm1012_vm14 = vcmask 1031168  }
  0xe0   :  { %v409_v59 = vpop.permute.xlu1 %408 }
  0xe1   :  { %v401_v60 = vpop.permute.xlu0 %400  ;;  %412 = vst.msk [vmem:[#allocation2 + $0x18] sm:$0xf0] %vm411_vm15, %v409_v59  ;;  %vm1254_vm15 = vcmask 900096  }
  0xe2   :  { %404 = vst.msk [vmem:[#allocation2 + $0x18] sm:$0xf] %vm403_vm0, %v401_v60  ;;  %vm1496_vm0 = vcmask 891904  }
  0xe4   :  { %v503_v61 = vpop.permute.xlu1 %502 }
  0xe5   :  { %v495_v62 = vpop.permute.xlu0 %494  ;;  %506 = vst.msk [vmem:[#allocation2 + $0x20] sm:$0xf0] %vm505_vm1, %v503_v61  ;;  %vm1738_vm1 = vcmask 883712  }
  0xe6   :  { %498 = vst.msk [vmem:[#allocation2 + $0x20] sm:$0xf] %vm497_vm2, %v495_v62  ;;  %vm1994_vm2 = vcmask 752640  }
  0xe8   :  { %v424_v63 = vpop.permute.xlu1 %423 }
  0xe9   :  { %v416_v0 = vpop.permute.xlu0 %415  ;;  %427 = vst.msk [vmem:[#allocation2 + $0x18] sm:$0xf0] %vm426_vm3, %v424_v63  ;;  %v5119_v63 = vld [vmem:[%s6363_s3 + $0x28] sm:$0xff]  ;;  %vm2239_vm3 = vcmask 744448  }
  0xea   :  { %419 = vst.msk [vmem:[#allocation2 + $0x18] sm:$0xf] %vm418_vm4, %v416_v0  ;;  %vm2484_vm4 = vcmask 736256  }
  0xeb   :  { %444 = vst.msk [vmem:[#allocation2 + $0x18] sm:$0xf0] %vm443_vm5, %v5811_v34  ;;  %vm2749_vm5 = vcmask 801792  }
  0xec   :  { %434 = vst.msk [vmem:[#allocation2 + $0x18] sm:$0xf] %vm433_vm6, %v5813_v35  ;;  %v518_v1 = vpop.permute.xlu1 %517  ;;  %v5107_v35 = vld [vmem:[%s6363_s3 + $0x10] sm:$0xff]  ;;  %vm2807_vm6 = vcmask 154624  }
  0xed   :  { %v510_v2 = vpop.permute.xlu0 %509  ;;  %521 = vst.msk [vmem:[#allocation2 + $0x20] sm:$0xf0] %vm520_vm7, %v518_v1  ;;  %vm2833_vm7 = vcmask 1047704  }
  0xee   :  { %513 = vst.msk [vmem:[#allocation2 + $0x20] sm:$0xf] %vm512_vm8, %v510_v2  ;;  %vm2838_vm8 = vcmask 957440  }
  0xef   :  { %2808 = vst.msk [vmem:[#allocation3] sm:$0xff] %vm2807_vm6, %v5505_v20 }
  0xf0   :  { %v533_v3 = vpop.permute.xlu1 %532 }
  0xf1   :  { %v525_v4 = vpop.permute.xlu0 %524  ;;  %536 = vst.msk [vmem:[#allocation2 + $0x20] sm:$0xf0] %vm535_vm9, %v533_v3  ;;  %vm2840_vm9 = vcmask 1048488  }
  0xf2   :  { %528 = vst.msk [vmem:[#allocation2 + $0x20] sm:$0xf] %vm527_vm11, %v525_v4 }
  0xf3   :  { %v5835_v5 = vld [vmem:[#allocation2 + $0x18] sm:$0xff] }
  0xf4   :  { %556 = vrot.lane.b32.xlu1 %v5835_v5, %s5529_s0 }
  0xf8   :  { %1004 = vrot.lane.b32.xlu1 %v5829_v56, %s5530_s1 }
  0xf9   :  { %v5841_v6 = vld [vmem:[#allocation2 + $0x20] sm:$0xff] }
  0xfa   :  { %558 = vrot.lane.b32.xlu0 %v5841_v6, %s5529_s0 }
  0xfc   :  { %1002 = vrot.lane.b32.xlu1 %v5825_v53, %s5530_s1 }
  0xfe   :  { %1006 = vrot.lane.b32.xlu0 %v5819_v46, %s5530_s1 }
 0x100   :  { %1010 = vrot.lane.b32.xlu1 %v5841_v6, %s5530_s1 }
 0x102   :  { %1008 = vrot.lane.b32.xlu0 %v5835_v5, %s5530_s1 }
 0x104   :  { %1248 = vrot.lane.b32.xlu1 %v5819_v46, %s5531_s14 }
 0x106   :  { %1246 = vrot.lane.b32.xlu0 %v5829_v56, %s5531_s14 }
 0x108   :  { %1250 = vrot.lane.b32.xlu1 %v5835_v5, %s5531_s14 }
 0x10a   :  { %1244 = vrot.lane.b32.xlu0 %v5825_v53, %s5531_s14 }
 0x10c   :  { %1488 = vrot.lane.b32.xlu1 %v5829_v56, %s5521_s15 }
 0x10e   :  { %1252 = vrot.lane.b32.xlu0 %v5841_v6, %s5531_s14 }
 0x110   :  { %1486 = vrot.lane.b32.xlu1 %v5825_v53, %s5521_s15 }
 0x112   :  { %1490 = vrot.lane.b32.xlu0 %v5819_v46, %s5521_s15 }
 0x114   :  { %1494 = vrot.lane.b32.xlu1 %v5841_v6, %s5521_s15 }
 0x116   :  { %1492 = vrot.lane.b32.xlu0 %v5835_v5, %s5521_s15 }
 0x118   :  { %1732 = vrot.lane.b32.xlu1 %v5819_v46, %s5532_s16 }
 0x11a   :  { %1730 = vrot.lane.b32.xlu0 %v5829_v56, %s5532_s16 }
 0x11c   :  { %1734 = vrot.lane.b32.xlu1 %v5835_v5, %s5532_s16 }
 0x11e   :  { %1728 = vrot.lane.b32.xlu0 %v5825_v53, %s5532_s16 }
 0x120   :  { %1984 = vrot.lane.b32.xlu1 %v5829_v56, %s5533_s17 }
 0x122   :  { %1736 = vrot.lane.b32.xlu0 %v5841_v6, %s5532_s16 }
 0x124   :  { %1982 = vrot.lane.b32.xlu1 %v5825_v53, %s5533_s17 }
 0x126   :  { %1986 = vrot.lane.b32.xlu0 %v5819_v46, %s5533_s17 }
 0x128   :  { %1990 = vrot.lane.b32.xlu1 %v5841_v6, %s5533_s17 }
 0x12a   :  { %1988 = vrot.lane.b32.xlu0 %v5835_v5, %s5533_s17 }
 0x12c   :  { %2229 = vrot.lane.b32.xlu1 %v5829_v56, %s5508_s28 }
 0x12e   :  { %1992 = vrot.lane.b32.xlu0 %v1975_v7, %s5533_s17 }
 0x130   :  { %2227 = vrot.lane.b32.xlu1 %v5825_v53, %s5508_s28 }
 0x132   :  { %2231 = vrot.lane.b32.xlu0 %v5819_v46, %s5508_s28 }
 0x134   :  { %2235 = vrot.lane.b32.xlu1 %v5841_v6, %s5508_s28 }
 0x136   :  { %2233 = vrot.lane.b32.xlu0 %v5835_v5, %s5508_s28 }
 0x138   :  { %2474 = vrot.lane.b32.xlu1 %v5829_v56, %s5534_s18 }
 0x13a   :  { %2237 = vrot.lane.b32.xlu0 %v1975_v7, %s5508_s28 }
 0x13c   :  { %2472 = vrot.lane.b32.xlu1 %v5825_v53, %s5534_s18 }
 0x13e   :  { %2476 = vrot.lane.b32.xlu0 %v5819_v46, %s5534_s18  ;;  %v555_v9 = vpop.permute.xlu1 %554 }
 0x140   :  { %2480 = vrot.lane.b32.xlu1 %v5841_v6, %s5534_s18 }
 0x142   :  { %2478 = vrot.lane.b32.xlu0 %v5835_v5, %s5534_s18 }
 0x146   :  { %2482 = vrot.lane.b32.xlu0 %v1975_v7, %s5534_s18 }
 0x14a   :  { %v551_v8 = vpop.permute.xlu0 %550 }
 0x14e   :  { %v553_v10 = vpop.permute.xlu0 %552 }
 0x14f   :  { %v562_v11 = vsel %vm560_vm12, %v553_v10, %v555_v9  ;;  %v561_v12 = vsel %vm560_vm12, %v551_v8, %v553_v10  ;;  %v5123_v8 = vld [vmem:[%s6363_s3 + $0x30] sm:$0xff] }
 0x150   :  { %573 = vmatprep.subr.mxu0 %v562_v11 }
 0x151   :  { %574 = vmatpush1.msra.mxu0 %v561_v12 }
 0x152   :  { %5101 = vmatmul.mubr.msk.f32.vlgmr.msra.gmra.mrb[0].mxu0 %vm39_vm10, %v5100_v13 }
 0x153   :  { %708 = vmatprep.mubr.f32.mxu0 %v5505_v20 }
 0x166   :  { %v557_v14 = vpop.permute.xlu1 %556 }
 0x167   :  { %v563_v19 = vsel %vm560_vm12, %v555_v9, %v557_v14 }
 0x16a   :  { %v1005_v15 = vpop.permute.xlu1 %1004 }
 0x16c   :  { %v559_v16 = vpop.permute.xlu0 %558 }
 0x16d   :  { %v564_v18 = vsel %vm560_vm12, %v557_v14, %v559_v16 }
 0x16e   :  { %v1003_v17 = vpop.permute.xlu1 %1002  ;;  %644 = vmatprep.subr.mxu0 %v564_v18  ;;  %v5127_v18 = vld [vmem:[%s6363_s3 + $0x38] sm:$0xff] }
 0x16f   :  { %645 = vmatpush1.msra.mxu0 %v563_v19  ;;  %v1013_v31 = vsel %vm1012_vm14, %v1003_v17, %v1005_v15 }
 0x170   :  { %5102 = vmatmul.mubr.msk.f32.vlgmr.msra.gmra.mrb[2].mxu0 %vm39_vm10, %v5100_v13  ;;  %5206 = vmatprep.subr.mxu0 %v5505_v20  ;;  %v1007_v21 = vpop.permute.xlu0 %1006 }
 0x171   :  { %5207 = vmatpush3.msra.mxu0 %v559_v16  ;;  %5208 = vmatprep.mubr.msk.f32.mxu0 %vm5535_vm13, %v5505_v20  ;;  %v1014_v30 = vsel %vm1012_vm14, %v1005_v15, %v1007_v21 }
 0x172   :  { %v1011_v22 = vpop.permute.xlu1 %1010  ;;  %788 = vmatprep.subr.mxu0 %v5829_v56 }
 0x174   :  { %5209 = vmatmul.mubr.msk.f32.vlgmr.msra.gmra.mrb[4].mxu0 %vm39_vm10, %v5100_v13  ;;  %v1009_v23 = vpop.permute.xlu0 %1008 }
 0x175   :  { %789 = vmatpush1.msra.mxu0 %v5825_v53  ;;  %852 = vmatprep.mubr.f32.mxu0 %v5505_v20  ;;  %v1016_v34 = vsel %vm1012_vm14, %v1009_v23, %v1011_v22  ;;  %v1015_v36 = vsel %vm1012_vm14, %v1007_v21, %v1009_v23 }
 0x176   :  { %v1249_v24 = vpop.permute.xlu1 %1248  ;;  %859 = vmatprep.subr.mxu0 %v5835_v5 }
 0x178   :  { %5104 = vmatmul.mubr.msk.f32.vlgmr.msra.gmra.mrb[0].mxu0 %vm39_vm10, %v537_v25  ;;  %v1247_v26 = vpop.permute.xlu0 %1246 }
 0x179   :  { %860 = vmatpush1.msra.mxu0 %v5819_v46  ;;  %923 = vmatprep.mubr.f32.mxu0 %v5505_v20  ;;  %v1256_v40 = vsel %vm1254_vm15, %v1247_v26, %v1249_v24 }
 0x17a   :  { %v1251_v27 = vpop.permute.xlu1 %1250  ;;  %5211 = vmatprep.subr.mxu0 %v5505_v20 }
 0x17b   :  { %v1257_v46 = vsel %vm1254_vm15, %v1249_v24, %v1251_v27 }
 0x17c   :  { %5105 = vmatmul.mubr.msk.f32.vlgmr.msra.gmra.mrb[2].mxu0 %vm39_vm10, %v537_v25  ;;  %v1245_v28 = vpop.permute.xlu0 %1244 }
 0x17d   :  { %5212 = vmatpush3.msra.mxu0 %v5841_v6  ;;  %5213 = vmatprep.mubr.msk.f32.mxu0 %vm5535_vm13, %v5505_v20  ;;  %v1255_v41 = vsel %vm1254_vm15, %v1245_v28, %v1247_v26 }
 0x17e   :  { %v1489_v29 = vpop.permute.xlu1 %1488  ;;  %1025 = vmatprep.subr.mxu0 %v1014_v30 }
 0x180   :  { %5214 = vmatmul.mubr.msk.f32.vlgmr.msra.gmra.mrb[4].mxu0 %vm39_vm10, %v537_v25  ;;  %v1253_v32 = vpop.permute.xlu0 %1252 }
 0x181   :  { %1026 = vmatpush1.msra.mxu0 %v1013_v31  ;;  %1089 = vmatprep.mubr.f32.mxu0 %v5505_v20  ;;  %v1258_v44 = vsel %vm1254_vm15, %v1251_v27, %v1253_v32 }
 0x182   :  { %v1487_v33 = vpop.permute.xlu1 %1486  ;;  %1096 = vmatprep.subr.mxu0 %v1016_v34 }
 0x183   :  { %v1497_v51 = vsel %vm1496_vm0, %v1487_v33, %v1489_v29  ;;  %v2716_v33 = vlaneseq }
 0x184   :  { %5108 = vmatmul.mubr.msk.f32.vlgmr.msra.gmra.mrb[0].mxu0 %vm39_vm10, %v5107_v35  ;;  %v1491_v37 = vpop.permute.xlu0 %1490 }
 0x185   :  { %1097 = vmatpush1.msra.mxu0 %v1015_v36  ;;  %1160 = vmatprep.mubr.f32.mxu0 %v5505_v20  ;;  %v1498_v49 = vsel %vm1496_vm0, %v1489_v29, %v1491_v37  ;;  %v5131_v29 = vld [vmem:[%s6363_s3 + $0x40] sm:$0xff]  ;;  %v2717_v34 = vshrl.u32 %v2716_v33, 7 }
 0x186   :  { %v1495_v38 = vpop.permute.xlu1 %1494  ;;  %5216 = vmatprep.subr.mxu0 %v5505_v20  ;;  %v33_v36 = vld [vmem:[%s6362_s2] sm:$0x1f] }
 0x188   :  { %5109 = vmatmul.mubr.msk.f32.vlgmr.msra.gmra.mrb[2].mxu0 %vm39_vm10, %v5107_v35  ;;  %v1493_v39 = vpop.permute.xlu0 %1492 }
 0x189   :  { %5217 = vmatpush3.msra.mxu0 %v1011_v22  ;;  %5218 = vmatprep.mubr.msk.f32.mxu0 %vm5535_vm13, %v5505_v20  ;;  %v1500_v53 = vsel %vm1496_vm0, %v1493_v39, %v1495_v38  ;;  %v1499_v55 = vsel %vm1496_vm0, %v1491_v37, %v1493_v39  ;;  %v2722_v37 = vsub.s32 1, %v2717_v34  ;;  %v2726_v39 = vsub.s32 2, %v2717_v34 }
 0x18a   :  { %1267 = vmatprep.subr.mxu0 %v1256_v40  ;;  %v1733_v42 = vpop.permute.xlu1 %1732 }
 0x18b   :  { %v6059_v40 = vrot.slane %v33_v36, %v2722_v37 }
 0x18c   :  { %5219 = vmatmul.mubr.msk.f32.vlgmr.msra.gmra.mrb[4].mxu0 %vm39_vm10, %v5107_v35  ;;  %v1731_v43 = vpop.permute.xlu0 %1730  ;;  %v2718_v35 = vsub.s32 0, %v2717_v34 }
 0x18d   :  { %1268 = vmatpush1.msra.mxu0 %v1255_v41  ;;  %1331 = vmatprep.mubr.f32.mxu0 %v5505_v20  ;;  %v1740_v58 = vsel %vm1738_vm1, %v1731_v43, %v1733_v42  ;;  %v2730_v41 = vsub.s32 3, %v2717_v34 }
 0x18e   :  { %1338 = vmatprep.subr.mxu0 %v1258_v44  ;;  %v1735_v48 = vpop.permute.xlu1 %1734 }
 0x18f   :  { %v1741_v0 = vsel %vm1738_vm1, %v1733_v42, %v1735_v48 }
 0x190   :  { %5112 = vmatmul.mubr.msk.f32.vlgmr.msra.gmra.mrb[0].mxu0 %vm39_vm10, %v5111_v45  ;;  %v1729_v47 = vpop.permute.xlu0 %1728 }
 0x191   :  { %1339 = vmatpush1.msra.mxu0 %v1257_v46  ;;  %1402 = vmatprep.mubr.f32.mxu0 %v5505_v20  ;;  %v1739_v60 = vsel %vm1738_vm1, %v1729_v47, %v1731_v43  ;;  %v2734_v46 = vsub.s32 4, %v2717_v34 }
 0x192   :  { %5221 = vmatprep.subr.mxu0 %v5505_v20  ;;  %v1985_v52 = vpop.permute.xlu1 %1984 }
 0x194   :  { %5113 = vmatmul.mubr.msk.f32.vlgmr.msra.gmra.mrb[2].mxu0 %vm39_vm10, %v5111_v45  ;;  %v1737_v50 = vpop.permute.xlu0 %1736 }
 0x195   :  { %5222 = vmatpush3.msra.mxu0 %v1253_v32  ;;  %5223 = vmatprep.mubr.msk.f32.mxu0 %vm5535_vm13, %v5505_v20  ;;  %v1742_v62 = vsel %vm1738_vm1, %v1735_v48, %v1737_v50  ;;  %v6065_v48 = vrot.slane %v33_v36, %v2730_v41 }
 0x196   :  { %1509 = vmatprep.subr.mxu0 %v1498_v49  ;;  %v1983_v57 = vpop.permute.xlu1 %1982 }
 0x197   :  { %v1995_v5 = vsel %vm1994_vm2, %v1983_v57, %v1985_v52 }
 0x198   :  { %5224 = vmatmul.mubr.msk.f32.vlgmr.msra.gmra.mrb[4].mxu0 %vm39_vm10, %v5111_v45  ;;  %v1987_v56 = vpop.permute.xlu0 %1986  ;;  %v6062_v45 = vrot.slane %v33_v36, %v2726_v39 }
 0x199   :  { %1510 = vmatpush1.msra.mxu0 %v1497_v51  ;;  %1573 = vmatprep.mubr.f32.mxu0 %v5505_v20  ;;  %v1996_v3 = vsel %vm1994_vm2, %v1985_v52, %v1987_v56 }
 0x19a   :  { %1580 = vmatprep.subr.mxu0 %v1500_v53  ;;  %v1991_v61 = vpop.permute.xlu1 %1990 }
 0x19c   :  { %5116 = vmatmul.mubr.msk.f32.vlgmr.msra.gmra.mrb[0].mxu0 %vm39_vm10, %v5115_v54  ;;  %v1989_v59 = vpop.permute.xlu0 %1988 }
 0x19d   :  { %1581 = vmatpush1.msra.mxu0 %v1499_v55  ;;  %1644 = vmatprep.mubr.f32.mxu0 %v5505_v20  ;;  %v1998_v7 = vsel %vm1994_vm2, %v1989_v59, %v1991_v61  ;;  %v1997_v9 = vsel %vm1994_vm2, %v1987_v56, %v1989_v59  ;;  %v6068_v55 = vrot.slane %v33_v36, %v2734_v46 }
 0x19e   :  { %5226 = vmatprep.subr.mxu0 %v5505_v20  ;;  %v2230_v2 = vpop.permute.xlu1 %2229 }
 0x1a0   :  { %5117 = vmatmul.mubr.msk.f32.vlgmr.msra.gmra.mrb[2].mxu0 %vm39_vm10, %v5115_v54  ;;  %v1993_v1 = vpop.permute.xlu0 %1992 }
 0x1a1   :  { %5227 = vmatpush3.msra.mxu0 %v1495_v38  ;;  %5228 = vmatprep.mubr.msk.f32.mxu0 %vm5535_vm13, %v5505_v20  ;;  %v1999_v12 = vsel %vm1994_vm2, %v1991_v61, %v1993_v1  ;;  %v6057_v38 = vrot.slane %v33_v36, %v2718_v35 }
 0x1a2   :  { %1751 = vmatprep.subr.mxu0 %v1740_v58  ;;  %v2228_v6 = vpop.permute.xlu1 %2227 }
 0x1a3   :  { %v2240_v15 = vsel %vm2239_vm3, %v2228_v6, %v2230_v2 }
 0x1a4   :  { %5229 = vmatmul.mubr.msk.f32.vlgmr.msra.gmra.mrb[4].mxu0 %vm39_vm10, %v5115_v54  ;;  %v2232_v4 = vpop.permute.xlu0 %2231 }
 0x1a5   :  { %1752 = vmatpush1.msra.mxu0 %v1739_v60  ;;  %1815 = vmatprep.mubr.f32.mxu0 %v5505_v20  ;;  %v2241_v13 = vsel %vm2239_vm3, %v2230_v2, %v2232_v4 }
 0x1a6   :  { %1822 = vmatprep.subr.mxu0 %v1742_v62  ;;  %v2236_v11 = vpop.permute.xlu1 %2235 }
 0x1a8   :  { %5120 = vmatmul.mubr.msk.f32.vlgmr.msra.gmra.mrb[0].mxu0 %vm39_vm10, %v5119_v63  ;;  %v2234_v10 = vpop.permute.xlu0 %2233 }
 0x1a9   :  { %1823 = vmatpush1.msra.mxu0 %v1741_v0  ;;  %1886 = vmatprep.mubr.f32.mxu0 %v5505_v20  ;;  %v2243_v17 = vsel %vm2239_vm3, %v2234_v10, %v2236_v11  ;;  %v2242_v19 = vsel %vm2239_vm3, %v2232_v4, %v2234_v10 }
 0x1aa   :  { %5231 = vmatprep.subr.mxu0 %v5505_v20  ;;  %v2475_v16 = vpop.permute.xlu1 %2474 }
 0x1ac   :  { %5121 = vmatmul.mubr.msk.f32.vlgmr.msra.gmra.mrb[2].mxu0 %vm39_vm10, %v5119_v63  ;;  %v2238_v14 = vpop.permute.xlu0 %2237 }
 0x1ad   :  { %5232 = vmatpush3.msra.mxu0 %v1737_v50  ;;  %5233 = vmatprep.mubr.msk.f32.mxu0 %vm5535_vm13, %v5505_v20  ;;  %v2244_v23 = vsel %vm2239_vm3, %v2236_v11, %v2238_v14 }
 0x1ae   :  { %2008 = vmatprep.subr.mxu0 %v1996_v3  ;;  %v2473_v22 = vpop.permute.xlu1 %2472 }
 0x1af   :  { %v2485_v26 = vsel %vm2484_vm4, %v2473_v22, %v2475_v16 }
 0x1b0   :  { %5234 = vmatmul.mubr.msk.f32.vlgmr.msra.gmra.mrb[4].mxu0 %vm39_vm10, %v5119_v63  ;;  %v2477_v21 = vpop.permute.xlu0 %2476 }
 0x1b1   :  { %2009 = vmatpush1.msra.mxu0 %v1995_v5  ;;  %2072 = vmatprep.mubr.f32.mxu0 %v5505_v20  ;;  %v2486_v24 = vsel %vm2484_vm4, %v2475_v16, %v2477_v21  ;;  %v2770_v16 = vld [vmem:[%s6364_s4] sm:$0xff] }
 0x1b2   :  { %2079 = vmatprep.subr.mxu0 %v1998_v7  ;;  %v2481_v27 = vpop.permute.xlu1 %2480 }
 0x1b4   :  { %5124 = vmatmul.mubr.msk.f32.vlgmr.msra.gmra.mrb[0].mxu0 %vm39_vm10, %v5123_v8  ;;  %v2479_v25 = vpop.permute.xlu0 %2478 }
 0x1b5   :  { %2080 = vmatpush1.msra.mxu0 %v1997_v9  ;;  %2143 = vmatprep.mubr.f32.mxu0 %v5505_v20  ;;  %v2488_v28 = vsel %vm2484_vm4, %v2479_v25, %v2481_v27  ;;  %v2487_v30 = vsel %vm2484_vm4, %v2477_v21, %v2479_v25 }
 0x1b6   :  { %5236 = vmatprep.subr.mxu0 %v5505_v20 }
 0x1b8   :  { %5125 = vmatmul.mubr.msk.f32.vlgmr.msra.gmra.mrb[2].mxu0 %vm39_vm10, %v5123_v8  ;;  %v2483_v31 = vpop.permute.xlu0 %2482 }
 0x1b9   :  { %5237 = vmatpush3.msra.mxu0 %v1999_v12  ;;  %5238 = vmatprep.mubr.msk.f32.mxu0 %vm5535_vm13, %v5505_v20  ;;  %v2489_v32 = vsel %vm2484_vm4, %v2481_v27, %v2483_v31 }
 0x1ba   :  { %2253 = vmatprep.subr.mxu0 %v2241_v13 }
 0x1bc   :  { %5239 = vmatmul.mubr.msk.f32.vlgmr.msra.gmra.mrb[4].mxu0 %vm39_vm10, %v5123_v8  ;;  %v5536_v8 = vmov 0  }
 0x1bd   :  { %2254 = vmatpush1.msra.mxu0 %v2240_v15  ;;  %2317 = vmatprep.mubr.f32.mxu0 %v5505_v20 }
 0x1be   :  { %2324 = vmatprep.subr.mxu0 %v2243_v17  ;;  %5434 = vset.pattern.permute.xlu0 %v5536_v8 }
 0x1bf   :  { %5435 = vset.pattern.permute.xlu1 %v5536_v8 }
 0x1c0   :  { %5128 = vmatmul.mubr.msk.f32.vlgmr.msra.gmra.mrb[0].mxu0 %vm39_vm10, %v5127_v18 }
 0x1c1   :  { %2325 = vmatpush1.msra.mxu0 %v2242_v19  ;;  %2388 = vmatprep.mubr.f32.mxu0 %v5505_v20  ;;  %v2774_v19 = vld [vmem:[%s6365_s5] sm:$0xff] }
 0x1c2   :  { %5241 = vmatprep.subr.mxu0 %v5505_v20 }
 0x1c4   :  { %5129 = vmatmul.mubr.msk.f32.vlgmr.msra.gmra.mrb[2].mxu0 %vm39_vm10, %v5127_v18 }
 0x1c5   :  { %5242 = vmatpush3.msra.mxu0 %v2244_v23  ;;  %5243 = vmatprep.mubr.msk.f32.mxu0 %vm5535_vm13, %v5505_v20 }
 0x1c6   :  { %2498 = vmatprep.subr.mxu0 %v2486_v24 }
 0x1c8   :  { %5244 = vmatmul.mubr.msk.f32.vlgmr.msra.gmra.mrb[4].mxu0 %vm39_vm10, %v5127_v18 }
 0x1c9   :  { %2499 = vmatpush1.msra.mxu0 %v2485_v26  ;;  %2562 = vmatprep.mubr.f32.mxu0 %v5505_v20 }
 0x1ca   :  { %2569 = vmatprep.subr.mxu0 %v2488_v28 }
 0x1cc   :  { %5132 = vmatmul.mubr.msk.f32.vlgmr.msra.gmra.mrb[0].mxu0 %vm39_vm10, %v5131_v29 }
 0x1cd   :  { %2570 = vmatpush1.msra.mxu0 %v2487_v30  ;;  %2633 = vmatprep.mubr.f32.mxu0 %v5505_v20 }
 0x1ce   :  { %5246 = vmatprep.subr.mxu0 %v5505_v20 }
 0x1d0   :  { %5133 = vmatmul.mubr.msk.f32.vlgmr.msra.gmra.mrb[2].mxu0 %vm39_vm10, %v5131_v29 }
 0x1d1   :  { %5247 = vmatpush3.msra.mxu0 %v2489_v32  ;;  %5248 = vmatprep.mubr.msk.f32.mxu0 %vm5535_vm13, %v5505_v20 }
 0x1d4   :  { %5249 = vmatmul.mubr.msk.f32.vlgmr.msra.gmra.mrb[4].mxu0 %vm39_vm10, %v5131_v29 }
 0x29f   :  { %v2564_v42 = vpop.f32.mrb[0].mxu0 }
 0x2a0   :  { %v2741_v43 = vmul.f32 %v6057_v38, %v2564_v42  ;;  %v2566_v44 = vpop.f32.mrb[1].mxu0 }
 0x2a1   :  { %v2742_v47 = vmul.f32 %v6059_v40, %v2566_v44 }
 0x2a2   :  { %v2754_v49 = vmul.f32 %v2741_v43, %v2564_v42 }
 0x2a3   :  { %v2746_v50 = vadd.f32 %v2742_v47, %v2741_v43  ;;  %v2755_v51 = vmul.f32 %v2742_v47, %v2566_v44  ;;  %v2635_v52 = vpop.f32.mrb[2].mxu0 }
 0x2a4   :  { %v2743_v53 = vmul.f32 %v6062_v45, %v2635_v52  ;;  %v2637_v54 = vpop.f32.mrb[3].mxu0 }
 0x2a5   :  { %v2759_v56 = vadd.f32 %v2755_v51, %v2754_v49  ;;  %v2744_v57 = vmul.f32 %v6065_v48, %v2637_v54 }
 0x2a6   :  { %v2747_v58 = vadd.f32 %v2746_v50, %v2743_v53  ;;  %v2756_v59 = vmul.f32 %v2743_v53, %v2635_v52 }
 0x2a7   :  { %v2757_v60 = vmul.f32 %v2744_v57, %v2637_v54  ;;  %v2706_v61 = vpop.f32.mrb[4].mxu0 }
 0x2a8   :  { %v2760_v62 = vadd.f32 %v2759_v56, %v2756_v59  ;;  %v2748_v63 = vadd.f32 %v2747_v58, %v2744_v57  ;;  %v2745_v0 = vmul.f32 %v6068_v55, %v2706_v61  ;;  %v5250_v1 = vpop.f32.mrb[5].mxu0 }
 0x2aa   :  { %v2761_v2 = vadd.f32 %v2760_v62, %v2757_v60  ;;  %v2758_v3 = vmul.f32 %v2745_v0, %v2706_v61  ;;  %v2750_v4 = vsel %vm2749_vm5, %v2745_v0, 0.0 }
 0x2ab   :  { %v2751_v5 = vadd.f32 %v2750_v4, %v2748_v63 }
 0x2ac   :  { %v2762_v6 = vsel %vm2749_vm5, %v2758_v3, 0.0 }
 0x2ad   :  { %2752 = vadd.xlane.f32.xlu1 %v2751_v5  ;;  %v2763_v7 = vadd.f32 %v2762_v6, %v2761_v2  ;;  %v5135_v2 = vld [vmem:[%s6366_s6 + $0x8] sm:$0xff] }
 0x2af   :  { %2764 = vadd.xlane.f32.xlu0 %v2763_v7 }
 0x33a   :  { %v2753_v9 = vpop.xlane.xlu1 %2752 }
 0x33b   :  { %v2766_v10 = vmul.f32 0.001953125, %v2753_v9 }
 0x33c   :  { %v2765_v11 = vpop.xlane.xlu0 %2764 }
 0x33d   :  { %v2768_v12 = vmul.f32 %v2766_v10, %v2766_v10  ;;  %v2767_v13 = vmul.f32 0.001953125, %v2765_v11 }
 0x33f   :  { %v2769_v14 = vsub.f32 %v2767_v13, %v2768_v12 }
 0x341   :  { %v2771_v15 = vadd.f32 1e-05, %v2769_v14 }
 0x343   :  { %5468 = vrsqrt.f32 %v2771_v15  ;;  %v2843_v15 = vld [vmem:[%s6366_s6] sm:$0xff] }
 0x34d   :  { %v5469_v17 = vpop.eup %5468 }
 0x34e   :  { %v2773_v18 = vmul.f32 %v5469_v17, %v2770_v16 }
 0x350   :  { %2779 = vperm.xlu0 %5434, %v2773_v18   ;;  %v2775_v21 = vmul.f32 %v2773_v18, %v2766_v10 }
 0x352   :  { %v2776_v22 = vsub.f32 %v2774_v19, %v2775_v21 }
 0x354   :  { %2789 = vperm.xlu1 %5435, %v2776_v22  }
 0x3cf   :  { %v2780_v23 = vpop.permute.xlu0 %2779 }
 0x3d0   :  { %v2782_v24 = vmul.f32 %v2780_v23, %v2564_v42  ;;  %v2783_v25 = vmul.f32 %v2780_v23, %v2566_v44  ;;  %v2784_v29 = vmul.f32 %v2780_v23, %v2635_v52  ;;  %v2785_v34 = vmul.f32 %v2780_v23, %v2637_v54 }
 0x3d1   :  { %v2786_v39 = vmul.f32 %v2780_v23, %v2706_v61  ;;  %v4276_v61 = vld [vmem:[#allocation3 + $0x28] sm:$0xff] }
 0x3d3   :  { %v2790_v26 = vpop.permute.xlu1 %2789 }
 0x3d4   :  { %v2792_v27 = vadd.f32 %v2790_v26, %v2782_v24  ;;  %v2793_v28 = vadd.f32 %v2790_v26, %v2783_v25  ;;  %v2794_v31 = vadd.f32 %v2790_v26, %v2784_v29  ;;  %v2795_v35 = vadd.f32 %v2790_v26, %v2785_v34  ;;  %v5142_v25 = vld [vmem:[%s6366_s6 + $0x10] sm:$0xff] }
 0x3d5   :  { %v2796_v41 = vadd.f32 %v2790_v26, %v2786_v39 }
 0x3d6   :  { %v2797_v30 = vmax.f32 %v2792_v27, 0.0  ;;  %v2798_v32 = vmax.f32 %v2793_v28, 0.0  ;;  %v2799_v36 = vmax.f32 %v2794_v31, 0.0  ;;  %v2800_v42 = vmax.f32 %v2795_v35, 0.0  ;;  %v5146_v35 = vld [vmem:[%s6366_s6 + $0x18] sm:$0xff] }
 0x3d7   :  { %v2801_v44 = vmax.f32 %v2796_v41, 0.0 }
 0x3d8   :  { %v2802_v33 = vmul.f32 %v2797_v30, %v6057_v38  ;;  %v2803_v37 = vmul.f32 %v2798_v32, %v6059_v40  ;;  %v2804_v43 = vmul.f32 %v2799_v36, %v6062_v45  ;;  %v2805_v46 = vmul.f32 %v2800_v42, %v6065_v48 }
 0x3d9   :  { %v2806_v47 = vmul.f32 %v2801_v44, %v6068_v55 }
 0x3da   :  { %2814 = vrot.lane.b32.xlu1 %v2802_v33, %s5498_s23 }
 0x3de   :  { %2816 = vrot.lane.b32.xlu1 %v2803_v37, %s5498_s23 }
 0x3e2   :  { %2818 = vrot.lane.b32.xlu1 %v2804_v43, %s5498_s23 }
 0x3e6   :  { %2820 = vrot.lane.b32.xlu1 %v2805_v46, %s5498_s23 }
 0x3ea   :  { %2822 = vrot.lane.b32.xlu1 %v2806_v47, %s5498_s23  ;;  %v5150_v47 = vld [vmem:[%s6366_s6 + $0x20] sm:$0xff] }
 0x44c   :  { %v2815_v49 = vpop.permute.xlu1 %2814 }
 0x44d   :  { %2834 = vst.msk [vmem:[#allocation3] sm:$0xff] %vm2833_vm7, %v2815_v49 }
 0x450   :  { %v2817_v50 = vpop.permute.xlu1 %2816 }
 0x451   :  { %v6093_v51 = vsel %vm2807_vm6, %v2815_v49, %v2817_v50 }
 0x452   :  { %2858 = vrot.lane.b32.xlu1 %v6093_v51, %s5529_s0 }
 0x454   :  { %v2819_v52 = vpop.permute.xlu1 %2818  ;;  %v6097_v53 = vld [vmem:[#allocation3] sm:$0xff] }
 0x455   :  { %v6100_v54 = vsel %vm2807_vm6, %v2817_v50, %v2819_v52  ;;  %2856 = vrot.lane.b32.xlu0 %v6097_v53, %s5529_s0 }
 0x456   :  { %2860 = vrot.lane.b32.xlu1 %v6100_v54, %s5529_s0 }
 0x458   :  { %v2821_v56 = vpop.permute.xlu1 %2820 }
 0x459   :  { %v6107_v57 = vsel %vm2807_vm6, %v2819_v52, %v2821_v56 }
 0x45a   :  { %2862 = vrot.lane.b32.xlu1 %v6107_v57, %s5529_s0 }
 0x45c   :  { %v2823_v58 = vpop.permute.xlu1 %2822 }
 0x45d   :  { %v2827_v59 = vsel %vm2807_vm6, %v2821_v56, %v2823_v58  ;;  %v5154_v58 = vld [vmem:[%s6366_s6 + $0x28] sm:$0xff] }
 0x45e   :  { %2839 = vst.msk [vmem:[#allocation3 + $0x20] sm:$0xff] %vm2838_vm8, %v2827_v59  ;;  %3309 = vrot.lane.b32.xlu1 %v6093_v51, %s5530_s1 }
 0x45f   :  { %2841 = vst.msk [vmem:[#allocation3 + $0x20] sm:$0xff] %vm2840_vm9, %v5505_v20 }
 0x462   :  { %3307 = vrot.lane.b32.xlu1 %v6097_v53, %s5530_s1 }
 0x466   :  { %v6117_v60 = vld [vmem:[#allocation3 + $0x20] sm:$0xff] }
 0x467   :  { %2864 = vrot.lane.b32.xlu0 %v6117_v60, %s5529_s0  ;;  %3315 = vrot.lane.b32.xlu1 %v6117_v60, %s5530_s1 }
 0x46b   :  { %3311 = vrot.lane.b32.xlu0 %v6100_v54, %s5530_s1  ;;  %3552 = vrot.lane.b32.xlu1 %v6100_v54, %s5531_s14 }
 0x46f   :  { %3313 = vrot.lane.b32.xlu0 %v6107_v57, %s5530_s1  ;;  %3554 = vrot.lane.b32.xlu1 %v6107_v57, %s5531_s14 }
 0x473   :  { %3550 = vrot.lane.b32.xlu0 %v6093_v51, %s5531_s14  ;;  %3791 = vrot.lane.b32.xlu1 %v6093_v51, %s5521_s15 }
 0x477   :  { %3548 = vrot.lane.b32.xlu0 %v6097_v53, %s5531_s14  ;;  %3789 = vrot.lane.b32.xlu1 %v6097_v53, %s5521_s15 }
 0x47b   :  { %3556 = vrot.lane.b32.xlu0 %v6117_v60, %s5531_s14  ;;  %3797 = vrot.lane.b32.xlu1 %v6117_v60, %s5521_s15 }
 0x47f   :  { %3793 = vrot.lane.b32.xlu0 %v6100_v54, %s5521_s15  ;;  %4034 = vrot.lane.b32.xlu1 %v6100_v54, %s5532_s16 }
 0x483   :  { %3795 = vrot.lane.b32.xlu0 %v6107_v57, %s5521_s15  ;;  %4036 = vrot.lane.b32.xlu1 %v6107_v57, %s5532_s16 }
 0x487   :  { %4032 = vrot.lane.b32.xlu0 %v6093_v51, %s5532_s16  ;;  %4285 = vrot.lane.b32.xlu1 %v6093_v51, %s5533_s17 }
 0x48b   :  { %4030 = vrot.lane.b32.xlu0 %v6097_v53, %s5532_s16  ;;  %4283 = vrot.lane.b32.xlu1 %v6097_v53, %s5533_s17 }
 0x48f   :  { %4038 = vrot.lane.b32.xlu0 %v6117_v60, %s5532_s16  ;;  %4291 = vrot.lane.b32.xlu1 %v6117_v60, %s5533_s17 }
 0x493   :  { %4287 = vrot.lane.b32.xlu0 %v6100_v54, %s5533_s17  ;;  %4529 = vrot.lane.b32.xlu1 %v6093_v51, %s5508_s28 }
 0x497   :  { %4289 = vrot.lane.b32.xlu0 %v6107_v57, %s5533_s17  ;;  %4527 = vrot.lane.b32.xlu1 %v6097_v53, %s5508_s28 }
 0x49b   :  { %4293 = vrot.lane.b32.xlu0 %v4276_v61, %s5533_s17  ;;  %4535 = vrot.lane.b32.xlu1 %v6117_v60, %s5508_s28 }
 0x49f   :  { %4531 = vrot.lane.b32.xlu0 %v6100_v54, %s5508_s28  ;;  %4773 = vrot.lane.b32.xlu1 %v6093_v51, %s5534_s18 }
 0x4a3   :  { %4533 = vrot.lane.b32.xlu0 %v6107_v57, %s5508_s28  ;;  %4771 = vrot.lane.b32.xlu1 %v6097_v53, %s5534_s18 }
 0x4a7   :  { %4537 = vrot.lane.b32.xlu0 %v4276_v61, %s5508_s28  ;;  %4779 = vrot.lane.b32.xlu1 %v6117_v60, %s5534_s18 }
 0x4ab   :  { %4775 = vrot.lane.b32.xlu0 %v6100_v54, %s5534_s18 }
 0x4af   :  { %4777 = vrot.lane.b32.xlu0 %v6107_v57, %s5534_s18 }
 0x4b3   :  { %4781 = vrot.lane.b32.xlu0 %v4276_v61, %s5534_s18 }
 0x4c4   :  { %v2859_v62 = vpop.permute.xlu1 %2858 }
 0x4c7   :  { %v2857_v63 = vpop.permute.xlu0 %2856 }
 0x4c8   :  { %v2861_v0 = vpop.permute.xlu1 %2860  ;;  %v2866_v3 = vsel %vm560_vm12, %v2857_v63, %v2859_v62 }
 0x4c9   :  { %v2867_v1 = vsel %vm560_vm12, %v2859_v62, %v2861_v0 }
 0x4ca   :  { %2878 = vmatprep.subr.mxu1 %v2867_v1 }
 0x4cb   :  { %2879 = vmatpush1.msra.mxu1 %v2866_v3  ;;  %v5158_v3 = vld [vmem:[%s6366_s6 + $0x30] sm:$0xff] }
 0x4cc   :  { %v2863_v4 = vpop.permute.xlu1 %2862  ;;  %5136 = vmatmul.mubr.msk.f32.vlgmr.msra.gmra.mrb[0].mxu1 %vm39_vm10, %v5135_v2 }
 0x4cd   :  { %3013 = vmatprep.mubr.f32.mxu1 %v5505_v20  ;;  %v2868_v10 = vsel %vm560_vm12, %v2861_v0, %v2863_v4 }
 0x4d0   :  { %v3310_v5 = vpop.permute.xlu1 %3309 }
 0x4d4   :  { %v3308_v6 = vpop.permute.xlu1 %3307 }
 0x4d5   :  { %v3317_v21 = vsel %vm1012_vm14, %v3308_v6, %v3310_v5 }
 0x4d9   :  { %v2865_v7 = vpop.permute.xlu0 %2864  ;;  %v3316_v8 = vpop.permute.xlu1 %3315 }
 0x4da   :  { %v2869_v9 = vsel %vm560_vm12, %v2863_v4, %v2865_v7 }
 0x4db   :  { %2949 = vmatprep.subr.mxu1 %v2869_v9 }
 0x4dc   :  { %2950 = vmatpush1.msra.mxu1 %v2868_v10 }
 0x4dd   :  { %v3312_v11 = vpop.permute.xlu0 %3311  ;;  %5137 = vmatmul.mubr.msk.f32.vlgmr.msra.gmra.mrb[2].mxu1 %vm39_vm10, %v5135_v2  ;;  %5251 = vmatprep.subr.mxu1 %v5505_v20  ;;  %v3553_v12 = vpop.permute.xlu1 %3552 }
 0x4de   :  { %5252 = vmatpush3.msra.mxu1 %v2865_v7  ;;  %5253 = vmatprep.mubr.msk.f32.mxu1 %vm5535_vm13, %v5505_v20  ;;  %v3318_v19 = vsel %vm1012_vm14, %v3310_v5, %v3312_v11 }
 0x4df   :  { %3093 = vmatprep.subr.mxu1 %v6093_v51 }
 0x4e1   :  { %v3314_v13 = vpop.permute.xlu0 %3313  ;;  %5254 = vmatmul.mubr.msk.f32.vlgmr.msra.gmra.mrb[4].mxu1 %vm39_vm10, %v5135_v2  ;;  %v3555_v14 = vpop.permute.xlu1 %3554 }
 0x4e2   :  { %3094 = vmatpush1.msra.mxu1 %v6097_v53  ;;  %3157 = vmatprep.mubr.f32.mxu1 %v5505_v20  ;;  %v3320_v24 = vsel %vm1012_vm14, %v3314_v13, %v3316_v8  ;;  %v3319_v26 = vsel %vm1012_vm14, %v3312_v11, %v3314_v13  ;;  %v3560_v36 = vsel %vm1254_vm15, %v3553_v12, %v3555_v14  ;;  %v5162_v13 = vld [vmem:[%s6366_s6 + $0x38] sm:$0xff] }
 0x4e3   :  { %3164 = vmatprep.subr.mxu1 %v6107_v57 }
 0x4e5   :  { %v3551_v16 = vpop.permute.xlu0 %3550  ;;  %5139 = vmatmul.mubr.msk.f32.vlgmr.msra.gmra.mrb[0].mxu1 %vm39_vm10, %v2843_v15  ;;  %v3792_v17 = vpop.permute.xlu1 %3791 }
 0x4e6   :  { %3165 = vmatpush1.msra.mxu1 %v6100_v54  ;;  %3228 = vmatprep.mubr.f32.mxu1 %v5505_v20  ;;  %v3559_v30 = vsel %vm1254_vm15, %v3551_v16, %v3553_v12 }
 0x4e7   :  { %5256 = vmatprep.subr.mxu1 %v5505_v20 }
 0x4e9   :  { %v3549_v18 = vpop.permute.xlu0 %3548  ;;  %5140 = vmatmul.mubr.msk.f32.vlgmr.msra.gmra.mrb[2].mxu1 %vm39_vm10, %v2843_v15  ;;  %v3790_v23 = vpop.permute.xlu1 %3789 }
 0x4ea   :  { %5257 = vmatpush3.msra.mxu1 %v6117_v60  ;;  %5258 = vmatprep.mubr.msk.f32.mxu1 %vm5535_vm13, %v5505_v20  ;;  %v3558_v31 = vsel %vm1254_vm15, %v3549_v18, %v3551_v16  ;;  %v3799_v43 = vsel %vm1496_vm0, %v3790_v23, %v3792_v17 }
 0x4eb   :  { %3329 = vmatprep.subr.mxu1 %v3318_v19 }
 0x4ed   :  { %v3557_v22 = vpop.permute.xlu0 %3556  ;;  %5259 = vmatmul.mubr.msk.f32.vlgmr.msra.gmra.mrb[4].mxu1 %vm39_vm10, %v2843_v15  ;;  %v3798_v28 = vpop.permute.xlu1 %3797 }
 0x4ee   :  { %3330 = vmatpush1.msra.mxu1 %v3317_v21  ;;  %3393 = vmatprep.mubr.f32.mxu1 %v5505_v20  ;;  %v3561_v34 = vsel %vm1254_vm15, %v3555_v14, %v3557_v22 }
 0x4ef   :  { %3400 = vmatprep.subr.mxu1 %v3320_v24  ;;  %v5166_v24 = vld [vmem:[%s6366_s6 + $0x40] sm:$0xff] }
 0x4f1   :  { %v3794_v27 = vpop.permute.xlu0 %3793  ;;  %5143 = vmatmul.mubr.msk.f32.vlgmr.msra.gmra.mrb[0].mxu1 %vm39_vm10, %v5142_v25  ;;  %v4035_v32 = vpop.permute.xlu1 %4034 }
 0x4f2   :  { %3401 = vmatpush1.msra.mxu1 %v3319_v26  ;;  %3464 = vmatprep.mubr.f32.mxu1 %v5505_v20  ;;  %v3800_v41 = vsel %vm1496_vm0, %v3792_v17, %v3794_v27 }
 0x4f3   :  { %5261 = vmatprep.subr.mxu1 %v5505_v20 }
 0x4f5   :  { %v3796_v29 = vpop.permute.xlu0 %3795  ;;  %5144 = vmatmul.mubr.msk.f32.vlgmr.msra.gmra.mrb[2].mxu1 %vm39_vm10, %v5142_v25  ;;  %v4037_v39 = vpop.permute.xlu1 %4036 }
 0x4f6   :  { %5262 = vmatpush3.msra.mxu1 %v3316_v8  ;;  %5263 = vmatprep.mubr.msk.f32.mxu1 %vm5535_vm13, %v5505_v20  ;;  %v3802_v46 = vsel %vm1496_vm0, %v3796_v29, %v3798_v28  ;;  %v3801_v49 = vsel %vm1496_vm0, %v3794_v27, %v3796_v29  ;;  %v4042_v59 = vsel %vm1738_vm1, %v4035_v32, %v4037_v39 }
 0x4f7   :  { %3570 = vmatprep.subr.mxu1 %v3559_v30 }
 0x4f9   :  { %v4033_v33 = vpop.permute.xlu0 %4032  ;;  %5264 = vmatmul.mubr.msk.f32.vlgmr.msra.gmra.mrb[4].mxu1 %vm39_vm10, %v5142_v25  ;;  %v4286_v44 = vpop.permute.xlu1 %4285 }
 0x4fa   :  { %3571 = vmatpush1.msra.mxu1 %v3558_v31  ;;  %3634 = vmatprep.mubr.f32.mxu1 %v5505_v20  ;;  %v4041_v52 = vsel %vm1738_vm1, %v4033_v33, %v4035_v32 }
 0x4fb   :  { %3641 = vmatprep.subr.mxu1 %v3561_v34 }
 0x4fd   :  { %v4031_v37 = vpop.permute.xlu0 %4030  ;;  %5147 = vmatmul.mubr.msk.f32.vlgmr.msra.gmra.mrb[0].mxu1 %vm39_vm10, %v5146_v35  ;;  %v4284_v51 = vpop.permute.xlu1 %4283 }
 0x4fe   :  { %3642 = vmatpush1.msra.mxu1 %v3560_v36  ;;  %3705 = vmatprep.mubr.f32.mxu1 %v5505_v20  ;;  %v4040_v54 = vsel %vm1738_vm1, %v4031_v37, %v4033_v33  ;;  %v4295_v0 = vsel %vm1994_vm2, %v4284_v51, %v4286_v44 }
 0x4ff   :  { %5266 = vmatprep.subr.mxu1 %v5505_v20 }
 0x501   :  { %5148 = vmatmul.mubr.msk.f32.vlgmr.msra.gmra.mrb[2].mxu1 %vm39_vm10, %v5146_v35  ;;  %v4039_v42 = vpop.permute.xlu0 %4038  ;;  %v4292_v56 = vpop.permute.xlu1 %4291 }
 0x502   :  { %5267 = vmatpush3.msra.mxu1 %v3557_v22  ;;  %5268 = vmatprep.mubr.msk.f32.mxu1 %vm5535_vm13, %v5505_v20  ;;  %v4043_v57 = vsel %vm1738_vm1, %v4037_v39, %v4039_v42 }
 0x503   :  { %3811 = vmatprep.subr.mxu1 %v3800_v41 }
 0x505   :  { %5269 = vmatmul.mubr.msk.f32.vlgmr.msra.gmra.mrb[4].mxu1 %vm39_vm10, %v5146_v35  ;;  %v4288_v50 = vpop.permute.xlu0 %4287  ;;  %v4530_v61 = vpop.permute.xlu1 %4529 }
 0x506   :  { %3812 = vmatpush1.msra.mxu1 %v3799_v43  ;;  %3875 = vmatprep.mubr.f32.mxu1 %v5505_v20  ;;  %v4296_v62 = vsel %vm1994_vm2, %v4286_v44, %v4288_v50 }
 0x507   :  { %3882 = vmatprep.subr.mxu1 %v3802_v46 }
 0x509   :  { %5151 = vmatmul.mubr.msk.f32.vlgmr.msra.gmra.mrb[0].mxu1 %vm39_vm10, %v5150_v47  ;;  %v4290_v53 = vpop.permute.xlu0 %4289  ;;  %v4528_v1 = vpop.permute.xlu1 %4527 }
 0x50a   :  { %3883 = vmatpush1.msra.mxu1 %v3801_v49  ;;  %3946 = vmatprep.mubr.f32.mxu1 %v5505_v20  ;;  %v4298_v2 = vsel %vm1994_vm2, %v4290_v53, %v4292_v56  ;;  %v4297_v4 = vsel %vm1994_vm2, %v4288_v50, %v4290_v53  ;;  %v4539_v10 = vsel %vm2239_vm3, %v4528_v1, %v4530_v61 }
 0x50b   :  { %5271 = vmatprep.subr.mxu1 %v5505_v20 }
 0x50d   :  { %5152 = vmatmul.mubr.msk.f32.vlgmr.msra.gmra.mrb[2].mxu1 %vm39_vm10, %v5150_v47  ;;  %v4294_v60 = vpop.permute.xlu0 %4293  ;;  %v4536_v6 = vpop.permute.xlu1 %4535 }
 0x50e   :  { %5272 = vmatpush3.msra.mxu1 %v3798_v28  ;;  %5273 = vmatprep.mubr.msk.f32.mxu1 %vm5535_vm13, %v5505_v20  ;;  %v4299_v7 = vsel %vm1994_vm2, %v4292_v56, %v4294_v60 }
 0x50f   :  { %4052 = vmatprep.subr.mxu1 %v4041_v52 }
 0x511   :  { %5274 = vmatmul.mubr.msk.f32.vlgmr.msra.gmra.mrb[4].mxu1 %vm39_vm10, %v5150_v47  ;;  %v4532_v63 = vpop.permute.xlu0 %4531  ;;  %v4774_v11 = vpop.permute.xlu1 %4773 }
 0x512   :  { %4053 = vmatpush1.msra.mxu1 %v4040_v54  ;;  %4116 = vmatprep.mubr.f32.mxu1 %v5505_v20  ;;  %v4540_v8 = vsel %vm2239_vm3, %v4530_v61, %v4532_v63 }
 0x513   :  { %4123 = vmatprep.subr.mxu1 %v4043_v57 }
 0x515   :  { %5155 = vmatmul.mubr.msk.f32.vlgmr.msra.gmra.mrb[0].mxu1 %vm39_vm10, %v5154_v58  ;;  %v4534_v5 = vpop.permute.xlu0 %4533  ;;  %v4772_v16 = vpop.permute.xlu1 %4771 }
 0x516   :  { %4124 = vmatpush1.msra.mxu1 %v4042_v59  ;;  %4187 = vmatprep.mubr.f32.mxu1 %v5505_v20  ;;  %v4542_v12 = vsel %vm2239_vm3, %v4534_v5, %v4536_v6  ;;  %v4541_v14 = vsel %vm2239_vm3, %v4532_v63, %v4534_v5  ;;  %v4783_v22 = vsel %vm2484_vm4, %v4772_v16, %v4774_v11  ;;  %v5045_v5 = vld [vmem:[%s6368_s8] sm:$0xff] }
 0x517   :  { %5276 = vmatprep.subr.mxu1 %v5505_v20 }
 0x519   :  { %5156 = vmatmul.mubr.msk.f32.vlgmr.msra.gmra.mrb[2].mxu1 %vm39_vm10, %v5154_v58  ;;  %v4538_v9 = vpop.permute.xlu0 %4537  ;;  %v4780_v21 = vpop.permute.xlu1 %4779 }
 0x51a   :  { %5277 = vmatpush3.msra.mxu1 %v4039_v42  ;;  %5278 = vmatprep.mubr.msk.f32.mxu1 %vm5535_vm13, %v5505_v20  ;;  %v4543_v17 = vsel %vm2239_vm3, %v4536_v6, %v4538_v9 }
 0x51b   :  { %4308 = vmatprep.subr.mxu1 %v4296_v62 }
 0x51d   :  { %5279 = vmatmul.mubr.msk.f32.vlgmr.msra.gmra.mrb[4].mxu1 %vm39_vm10, %v5154_v58  ;;  %v4776_v15 = vpop.permute.xlu0 %4775 }
 0x51e   :  { %4309 = vmatpush1.msra.mxu1 %v4295_v0  ;;  %4372 = vmatprep.mubr.f32.mxu1 %v5505_v20  ;;  %v4784_v18 = vsel %vm2484_vm4, %v4774_v11, %v4776_v15 }
 0x51f   :  { %4379 = vmatprep.subr.mxu1 %v4298_v2  ;;  %v5041_v2 = vld [vmem:[%s6367_s7] sm:$0xff]  ;;  %s5537_s7 = smov [#allocation4]  }
 0x520   :  { %s5092_s8 = sshll.u32 %s5537_s7, 4  ;;  %s5093_s8 = int_to_ptr.vmem [resolvable:$true] %s5092_s8 }
 0x521   :  { %5159 = vmatmul.mubr.msk.f32.vlgmr.msra.gmra.mrb[0].mxu1 %vm39_vm10, %v5158_v3  ;;  %v4778_v19 = vpop.permute.xlu0 %4777  ;;  %s5472_s3 = scalar_lea.vmem %s5093_s8, 768  ;;  %p5477_p1 = scmp.lt.s32.totalorder %s5093_s8, %s5093_s8 }
 0x522   :  { %4380 = vmatpush1.msra.mxu1 %v4297_v4  ;;  %4443 = vmatprep.mubr.f32.mxu1 %v5505_v20  ;;  %v4786_v23 = vsel %vm2484_vm4, %v4778_v19, %v4780_v21  ;;  %v4785_v25 = vsel %vm2484_vm4, %v4776_v15, %v4778_v19  ;;  %p5473_p0 = scmp.ne.s32.totalorder %s5093_s8, %s5472_s3  ;;  %p5478_p2 = scmp.lt.s32.totalorder %s5472_s3, %s5472_s3 }
 0x523   :  { %5281 = vmatprep.subr.mxu1 %v5505_v20 }
 0x524   :  { %p5479_p3 = por %p5478_p2, %p5477_p1 }
 0x525   :  { %5160 = vmatmul.mubr.msk.f32.vlgmr.msra.gmra.mrb[2].mxu1 %vm39_vm10, %v5158_v3  ;;  %v4782_v26 = vpop.permute.xlu0 %4781 }
 0x526   :  { %5282 = vmatpush3.msra.mxu1 %v4299_v7  ;;  %5283 = vmatprep.mubr.msk.f32.mxu1 %vm5535_vm13, %v5505_v20  ;;  %v4787_v27 = vsel %vm2484_vm4, %v4780_v21, %v4782_v26  ;;  %p5480_p4 = pnand %p5479_p3, %p5473_p0 }
 0x527   :  { %4552 = vmatprep.subr.mxu1 %v4540_v8 }
 0x529   :  { %5284 = vmatmul.mubr.msk.f32.vlgmr.msra.gmra.mrb[4].mxu1 %vm39_vm10, %v5158_v3 }
 0x52a   :  { %4553 = vmatpush1.msra.mxu1 %v4539_v10  ;;  %4616 = vmatprep.mubr.f32.mxu1 %v5505_v20 }
 0x52b   :  { %4623 = vmatprep.subr.mxu1 %v4542_v12 }
 0x52d   :  { %5163 = vmatmul.mubr.msk.f32.vlgmr.msra.gmra.mrb[0].mxu1 %vm39_vm10, %v5162_v13 }
 0x52e   :  { %4624 = vmatpush1.msra.mxu1 %v4541_v14  ;;  %4687 = vmatprep.mubr.f32.mxu1 %v5505_v20 }
 0x52f   :  { %5286 = vmatprep.subr.mxu1 %v5505_v20 }
 0x531   :  { %5164 = vmatmul.mubr.msk.f32.vlgmr.msra.gmra.mrb[2].mxu1 %vm39_vm10, %v5162_v13 }
 0x532   :  { %5287 = vmatpush3.msra.mxu1 %v4543_v17  ;;  %5288 = vmatprep.mubr.msk.f32.mxu1 %vm5535_vm13, %v5505_v20 }
 0x533   :  { %4796 = vmatprep.subr.mxu1 %v4784_v18 }
 0x535   :  { %5289 = vmatmul.mubr.msk.f32.vlgmr.msra.gmra.mrb[4].mxu1 %vm39_vm10, %v5162_v13 }
 0x536   :  { %4797 = vmatpush1.msra.mxu1 %v4783_v22  ;;  %4860 = vmatprep.mubr.f32.mxu1 %v5505_v20 }
 0x537   :  { %4867 = vmatprep.subr.mxu1 %v4786_v23 }
 0x539   :  { %5167 = vmatmul.mubr.msk.f32.vlgmr.msra.gmra.mrb[0].mxu1 %vm39_vm10, %v5166_v24 }
 0x53a   :  { %4868 = vmatpush1.msra.mxu1 %v4785_v25  ;;  %4931 = vmatprep.mubr.f32.mxu1 %v5505_v20 }
 0x53b   :  { %5291 = vmatprep.subr.mxu1 %v5505_v20 }
 0x53d   :  { %5168 = vmatmul.mubr.msk.f32.vlgmr.msra.gmra.mrb[2].mxu1 %vm39_vm10, %v5166_v24 }
 0x53e   :  { %5292 = vmatpush3.msra.mxu1 %v4787_v27  ;;  %5293 = vmatprep.mubr.msk.f32.mxu1 %vm5535_vm13, %v5505_v20 }
 0x541   :  { %5294 = vmatmul.mubr.msk.f32.vlgmr.msra.gmra.mrb[4].mxu1 %vm39_vm10, %v5166_v24  ;;  %vm5083_vm10 = vcmask 1048336  }
 0x60c   :  { %v4862_v28 = vpop.f32.mrb[0].mxu1 }
 0x60d   :  { %v5013_v29 = vmul.f32 %v4862_v28, %v6057_v38  ;;  %v4864_v30 = vpop.f32.mrb[1].mxu1 }
 0x60e   :  { %v5014_v31 = vmul.f32 %v4864_v30, %v6059_v40 }
 0x60f   :  { %v5025_v32 = vmul.f32 %v5013_v29, %v4862_v28 }
 0x610   :  { %v5018_v33 = vadd.f32 %v5014_v31, %v5013_v29  ;;  %v5026_v34 = vmul.f32 %v5014_v31, %v4864_v30  ;;  %v4933_v35 = vpop.f32.mrb[2].mxu1 }
 0x611   :  { %v5015_v36 = vmul.f32 %v4933_v35, %v6062_v45  ;;  %v4935_v37 = vpop.f32.mrb[3].mxu1 }
 0x612   :  { %v5030_v39 = vadd.f32 %v5026_v34, %v5025_v32  ;;  %v5016_v41 = vmul.f32 %v4935_v37, %v6065_v48 }
 0x613   :  { %v5019_v42 = vadd.f32 %v5018_v33, %v5015_v36  ;;  %v5027_v43 = vmul.f32 %v5015_v36, %v4933_v35 }
 0x614   :  { %v5028_v44 = vmul.f32 %v5016_v41, %v4935_v37  ;;  %v5004_v46 = vpop.f32.mrb[4].mxu1 }
 0x615   :  { %v5031_v47 = vadd.f32 %v5030_v39, %v5027_v43  ;;  %v5020_v49 = vadd.f32 %v5019_v42, %v5016_v41  ;;  %v5017_v50 = vmul.f32 %v5004_v46, %v6068_v55  ;;  %v5295_v51 = vpop.f32.mrb[5].mxu1 }
 0x617   :  { %v5032_v52 = vadd.f32 %v5031_v47, %v5028_v44  ;;  %v5029_v53 = vmul.f32 %v5017_v50, %v5004_v46  ;;  %v5021_v54 = vsel %vm2749_vm5, %v5017_v50, 0.0 }
 0x618   :  { %v5022_v56 = vadd.f32 %v5021_v54, %v5020_v49 }
 0x619   :  { %v5033_v57 = vsel %vm2749_vm5, %v5029_v53, 0.0 }
 0x61a   :  { %5023 = vadd.xlane.f32.xlu1 %v5022_v56  ;;  %v5034_v58 = vadd.f32 %v5033_v57, %v5032_v52 }
 0x61c   :  { %5035 = vadd.xlane.f32.xlu0 %v5034_v58 }
 0x6a7   :  { %v5024_v59 = vpop.xlane.xlu1 %5023 }
 0x6a8   :  { %v5037_v60 = vmul.f32 0.001953125, %v5024_v59 }
 0x6a9   :  { %v5036_v61 = vpop.xlane.xlu0 %5035 }
 0x6aa   :  { %v5039_v62 = vmul.f32 %v5037_v60, %v5037_v60  ;;  %v5038_v63 = vmul.f32 0.001953125, %v5036_v61 }
 0x6ac   :  { %v5040_v0 = vsub.f32 %v5038_v63, %v5039_v62 }
 0x6ae   :  { %v5042_v1 = vadd.f32 1e-05, %v5040_v0 }
 0x6b0   :  { %5470 = vrsqrt.f32 %v5042_v1 }
 0x6ba   :  { %v5471_v3 = vpop.eup %5470 }
 0x6bb   :  { %v5044_v4 = vmul.f32 %v5471_v3, %v5041_v2 }
 0x6bd   :  { %5050 = vperm.xlu0 %5434, %v5044_v4   ;;  %v5046_v6 = vmul.f32 %v5044_v4, %v5037_v60 }
 0x6bf   :  { %v5047_v7 = vsub.f32 %v5045_v5, %v5046_v6 }
 0x6c1   :  { %5060 = vperm.xlu1 %5435, %v5047_v7  }
 0x73c   :  { %v5051_v8 = vpop.permute.xlu0 %5050 }
 0x73d   :  { %v5053_v9 = vmul.f32 %v5051_v8, %v4862_v28  ;;  %v5054_v10 = vmul.f32 %v5051_v8, %v4864_v30  ;;  %v5055_v11 = vmul.f32 %v5051_v8, %v4933_v35  ;;  %v5056_v12 = vmul.f32 %v5051_v8, %v4935_v37 }
 0x73e   :  { %v5057_v13 = vmul.f32 %v5051_v8, %v5004_v46 }
 0x740   :  { %v5061_v14 = vpop.permute.xlu1 %5060 }
 0x741   :  { %v5063_v15 = vadd.f32 %v5061_v14, %v5053_v9  ;;  %v5064_v16 = vadd.f32 %v5061_v14, %v5054_v10  ;;  %v5065_v17 = vadd.f32 %v5061_v14, %v5055_v11  ;;  %v5066_v18 = vadd.f32 %v5061_v14, %v5056_v12 }
 0x742   :  { %v5067_v19 = vadd.f32 %v5061_v14, %v5057_v13 }
 0x743   :  { %v5068_v21 = vmax.f32 %v5063_v15, 0.0  ;;  %v5069_v22 = vmax.f32 %v5064_v16, 0.0  ;;  %v5070_v23 = vmax.f32 %v5065_v17, 0.0  ;;  %v5071_v24 = vmax.f32 %v5066_v18, 0.0 }
 0x744   :  { %v5072_v25 = vmax.f32 %v5067_v19, 0.0 }
 0x745   :  { %v5073_v26 = vmul.f32 %v5068_v21, %v6057_v38  ;;  %v5074_v27 = vmul.f32 %v5069_v22, %v6059_v40  ;;  %v5075_v28 = vmul.f32 %v5070_v23, %v6062_v45  ;;  %v5076_v29 = vmul.f32 %v5071_v24, %v6065_v48 }
 0x746   :  { %v5077_v30 = vmul.f32 %v5072_v25, %v6068_v55 }
 0x747   :  { %5078 = vst [vmem:[#allocation4] sm:$0xff] %v5073_v26  ;;  %5079 = vst [vmem:[#allocation4 + $0x8] sm:$0xff] %v5074_v27 }
 0x748   :  { %5080 = vst [vmem:[#allocation4 + $0x10] sm:$0xff] %v5075_v28  ;;  %5081 = vst [vmem:[#allocation4 + $0x18] sm:$0xff] %v5076_v29 }
 0x749   :  { %5082 = vst.msk [vmem:[#allocation4 + $0x20] sm:$0xff] %vm2749_vm5, %v5077_v30 }
 0x74a   :  { %5084 = vst.msk [vmem:[#allocation4 + $0x20] sm:$0xff] %vm5083_vm10, %v5505_v20 }
 0x74b   :  { %5483 = shalt.err (!%p5480_p4)
}
 0x74c   :  { %s5484_s25 = scalar_lea.hbm %s6369_s9, 768 }
 0x74d   :  { %p5485_p5 = scmp.ne.s32.totalorder %s6369_s9, %s5484_s25  ;;  %p5488_p6 = scmp.lt.u32.totalorder %s5484_s25, %s6369_s9 }
 0x74f   :  { %p5490_p7 = pnand %p5488_p6, %p5485_p5 }
 0x751   :  { %5493 = shalt.err (!%p5490_p7)
}
 0x752   :  { %5095 = dma.vmem_to_hbm [thread:$0]  %s5093_s8, 768, %s6369_s9, [#allocation5]  }
 0x753   :  { %5494 = dma.done.wait [#allocation5], 768  }
 0x754   :  { %5495 = vsyncadd [#allocation5], 4294966528 }
 0x755   :  { %5099 = vsyncpa [#allocation5], 1 }

</bundles_post_ra>
